<compile_context>
chip_gen: v7x
topology: tpu7x:2x2x1
jax: 0.10.0
libtpu: 0.0.40
codegen_flags: <defaults>
</compile_context>

<pallas_src>
import functools

import numpy as np

import jax
import jax.numpy as jnp
from jax import lax
from jax.experimental import pallas as pl
from jax.experimental.pallas import tpu as pltpu


def _round_up(v, m):
    return (v + m - 1) // m * m


# ----------------------------------------------------------------------------
# Kernel 1: fused protein branch
#   one-hot embedding matmul -> Conv1d(k=3,pad=1)+relu x3 (roll-based taps)
#   -> three AdaptiveMaxPool1d(1) pools, written lane-dense into [Bb, 384]
# ----------------------------------------------------------------------------
def _protein_kernel(ids_ref, emb_ref, w1_ref, b1_ref, w2_ref, b2_ref,
                    w3_ref, b3_ref, o_ref, *, seq_len, bb):
    f32, bf16 = jnp.float32, jnp.bfloat16
    L = seq_len
    BL = bb * L

    # Embedding lookup as a one-hot matmul (vocab padded 26 -> 128 lanes).
    ids = ids_ref[...]                                           # [BL, 1] int32
    lane = lax.broadcasted_iota(jnp.int32, (BL, 128), 1)
    onehot = (lane == ids).astype(bf16)                          # [BL, 128]
    h = jnp.dot(onehot, emb_ref[...],
                preferred_element_type=f32).astype(bf16)         # [BL, 256]

    # Row-position masks so the k = -1 / +1 taps never cross protein
    # boundaries (the BL rows are bb proteins of L rows each, concatenated).
    pos = lax.broadcasted_iota(jnp.int32, (bb, L, 128), 1).reshape(BL, 128)
    m_left = pos != 0            # row i has a valid i-1 neighbour in-protein
    m_right = pos != (L - 1)     # row i has a valid i+1 neighbour in-protein

    def conv_relu(hin_bf16, w_ref, b_ref):
        # Conv1d(k=3, pad=1): out[i] = x[i-1]@W0 + x[i]@W1 + x[i+1]@W2.
        z0 = jnp.dot(hin_bf16, w_ref[0], preferred_element_type=f32)
        z1 = jnp.dot(hin_bf16, w_ref[1], preferred_element_type=f32)
        z2 = jnp.dot(hin_bf16, w_ref[2], preferred_element_type=f32)
        # roll(+1) brings row i-1 to row i; roll(BL-1) == roll(-1) brings
        # row i+1 to row i.  Edge/boundary rows are masked to the zero pad.
        left = jnp.where(m_left, pltpu.roll(z0, 1, 0), 0.0)
        right = jnp.where(m_right, pltpu.roll(z2, BL - 1, 0), 0.0)
        return jnp.maximum(left + z1 + right + b_ref[...], 0.0)  # [BL,128] f32

    c1 = conv_relu(h, w1_ref, b1_ref)
    c2 = conv_relu(c1.astype(bf16), w2_ref, b2_ref)
    c3 = conv_relu(c2.astype(bf16), w3_ref, b3_ref)

    def pool(c):                       # AdaptiveMaxPool1d(1): max over L
        return jnp.max(c.reshape(bb, L, 128), axis=1)            # [bb, 128]

    # Disjoint 128-lane slices of the dense output block (no concat copy).
    o_ref[:, 0:128] = pool(c1)
    o_ref[:, 128:256] = pool(c2)
    o_ref[:, 256:384] = pool(c3)


def protein_branch(ids_flat, q, seq_len, Bp, bb=8):
    num_blocks = Bp // bb
    weights = [q["embed_pad"], q["cnn1_w"], q["cnn1_b"], q["cnn2_w"],
               q["cnn2_b"], q["cnn3_w"], q["cnn3_b"]]

    def full(arr):
        return pl.BlockSpec(arr.shape, lambda g: (0,) * arr.ndim)

    return pl.pallas_call(
        functools.partial(_protein_kernel, seq_len=seq_len, bb=bb),
        out_shape=jax.ShapeDtypeStruct((Bp, 384), jnp.float32),
        grid=(num_blocks,),
        in_specs=[pl.BlockSpec((bb * seq_len, 1), lambda g: (g, 0))]
                 + [full(w) for w in weights],
        out_specs=pl.BlockSpec((bb, 384), lambda g: (g, 0)),
        compiler_params=pltpu.CompilerParams(
            dimension_semantics=("parallel",),     # v7x can split over 2 TCs
            vmem_limit_bytes=48 * 1024 * 1024),
    )(ids_flat, *weights)


# ----------------------------------------------------------------------------
# Kernel 2: fused graph branch + FC head
#   GCN x3 -> per-graph max pool (scalar-prefetched offsets + pl.ds windows)
#   -> fc_g1+relu -> fc_g2 -> fc_sequence1/2 -> concat -> fc1 -> fc2 -> out
# ----------------------------------------------------------------------------
def _graph_head_kernel(offs_ref, cnts_ref,
                       a_ref, x_ref, seq_ref,
                       w1_ref, b1_ref, w2_ref, b2_ref, w3_ref, b3_ref,
                       g1w_ref, g1b_ref, g2w_ref, g2b_ref,
                       s1w_ref, s1b_ref, s2w_ref, s2b_ref,
                       f1w_ref, f1b_ref, f2w_ref, f2b_ref,
                       ow_ref, ob_ref,
                       o_ref, concat_ref,
                       *, num_graphs, bp, n_pad, max_nodes):
    f32, bf16 = jnp.float32, jnp.bfloat16
    a = a_ref[...]                                    # [Np, Np] bf16

    def gcn(h_bf16, w_ref, b_ref):
        xw = jnp.dot(h_bf16, w_ref[...], preferred_element_type=f32)
        agg = jnp.dot(a, xw.astype(bf16), preferred_element_type=f32)
        return jnp.maximum(agg + b_ref[...], 0.0)     # f32

    h1 = gcn(x_ref[...], w1_ref, b1_ref)              # [Np, 128]
    h2 = gcn(h1.astype(bf16), w2_ref, b2_ref)         # [Np, 256]
    h3 = gcn(h2.astype(bf16), w3_ref, b3_ref)         # [Np, 384]

    # Stage the concat once (dense, lane-aligned) so per-graph node windows
    # can be sliced dynamically; zero the tail so windows never read junk.
    concat_ref[0:n_pad, :] = jnp.concatenate([h1, h2, h3], axis=1)
    concat_ref[n_pad:n_pad + max_nodes, :] = jnp.zeros((max_nodes, 768), f32)

    # Per-graph global max pool: nodes are sorted by graph id, so graph b is
    # the contiguous row window [offs[b], offs[b]+cnt[b]).  Rows beyond the
    # count are masked to 0, which is exact because every pooled feature is a
    # post-ReLU value (>= 0) and every graph has >= 1 node.
    row_idx = lax.broadcasted_iota(jnp.int32, (max_nodes, 768), 0)
    rows = []
    for b in range(num_graphs):                       # small static unroll
        start = offs_ref[b]
        cnt = cnts_ref[b]
        win = concat_ref[pl.ds(start, max_nodes), :]  # [max_nodes, 768]
        win = jnp.where(row_idx < cnt, win, 0.0)
        rows.append(jnp.max(win, axis=0, keepdims=True))
    if bp > num_graphs:
        rows.append(jnp.zeros((bp - num_graphs, 768), f32))
    pooled = jnp.concatenate(rows, axis=0)            # [Bp, 768] (value, no
                                                      #  scratch round trip)

    # fc_g1 + relu -> fc_g2  (dropout = identity in eval mode)
    g1 = jnp.maximum(
        jnp.dot(pooled.astype(bf16), g1w_ref[...], preferred_element_type=f32)
        + g1b_ref[...], 0.0)
    xg = (jnp.dot(g1.astype(bf16), g2w_ref[...], preferred_element_type=f32)
          + g2b_ref[...])                             # [Bp, 128]

    # Protein FC stack.  NOTE: per the PyTorch reference there is NO ReLU
    # between fc_sequence1 and fc_sequence2.
    xt = (jnp.dot(seq_ref[...].astype(bf16), s1w_ref[...],
                  preferred_element_type=f32) + s1b_ref[...])
    xt = (jnp.dot(xt.astype(bf16), s2w_ref[...],
                  preferred_element_type=f32) + s2b_ref[...])    # [Bp, 128]

    # Head: concat -> fc1+relu -> fc2+relu -> out (dropout = identity).
    xc = jnp.concatenate([xg, xt], axis=1)            # [Bp, 256]
    h = jnp.maximum(jnp.dot(xc.astype(bf16), f1w_ref[...],
                            preferred_element_type=f32) + f1b_ref[...], 0.0)
    h = jnp.maximum(jnp.dot(h.astype(bf16), f2w_ref[...],
                            preferred_element_type=f32) + f2b_ref[...], 0.0)
    o_ref[...] = (jnp.dot(h.astype(bf16), ow_ref[...],
                          preferred_element_type=f32) + ob_ref[...])


def graph_and_head(offs, cnts, a_hat_p, x_p, seq_cat, q, num_graphs, Bp,
                   max_nodes):
    Np = a_hat_p.shape[0]
    dense_args = [a_hat_p, x_p, seq_cat,
                  q["gcn1_w"], q["gcn1_b"], q["gcn2_w"], q["gcn2_b"],
                  q["gcn3_w"], q["gcn3_b"],
                  q["fc_g1_w"], q["fc_g1_b"], q["fc_g2_w"], q["fc_g2_b"],
                  q["fc_s1_w"], q["fc_s1_b"], q["fc_s2_w"], q["fc_s2_b"],
                  q["fc1_w"], q["fc1_b"], q["fc2_w"], q["fc2_b"],
                  q["out_w"], q["out_b"]]

    def full(arr):
        # Resident full blocks; index_map sees (grid_idx, offs_ref, cnts_ref).
        return pl.BlockSpec(arr.shape, lambda i, o, c: (0,) * arr.ndim)

    grid_spec = pltpu.PrefetchScalarGridSpec(
        num_scalar_prefetch=2,                   # offs, cnts -> SMEM
        grid=(1,),
        in_specs=[full(arg) for arg in dense_args],
        out_specs=pl.BlockSpec((Bp, 128), lambda i, o, c: (0, 0)),
        scratch_shapes=[pltpu.VMEM((Np + max_nodes, 768), jnp.float32)],
    )
    return pl.pallas_call(
        functools.partial(_graph_head_kernel, num_graphs=num_graphs, bp=Bp,
                          n_pad=Np, max_nodes=max_nodes),
        out_shape=jax.ShapeDtypeStruct((Bp, 128), jnp.float32),
        grid_spec=grid_spec,
        compiler_params=pltpu.CompilerParams(
            dimension_semantics=("arbitrary",),
            vmem_limit_bytes=48 * 1024 * 1024),
    )(offs, cnts, *dense_args)


# ----------------------------------------------------------------------------
# JAX glue
# ----------------------------------------------------------------------------
def normalized_adjacency(edge_index, num_nodes):
    """A_hat = D^-1/2 (A + I) D^-1/2 (GCNConv normalization with self loops)."""
    src, dst = edge_index[0], edge_index[1]
    a = jnp.zeros((num_nodes, num_nodes), jnp.float32).at[src, dst].set(1.0)
    a = a + jnp.eye(num_nodes, dtype=jnp.float32)
    deg = jnp.sum(a, axis=1)
    dinv = 1.0 / jnp.sqrt(jnp.maximum(deg, 1e-12))
    return dinv[:, None] * a * dinv[None, :]


# ----------------------------------------------------------------------------
# Parameters: logical (PyTorch-shaped, already [in, out]) + kernel-ready
# (128-lane padded layouts, weights bf16, biases/epilogues f32)
# ----------------------------------------------------------------------------
def init_params(key, num_feature_xd=78, num_feature_xt=25, embed_dim=256,
                output_dim=128):
    keys = iter(jax.random.split(key, 40))

    def lin(k, fan_in, fan_out):
        w = jax.random.normal(k, (fan_in, fan_out), jnp.float32) / jnp.sqrt(fan_in)
        b = jnp.zeros((fan_out,), jnp.float32) + 0.01
        return w, b

    p = {}
    p["gcn1_w"], p["gcn1_b"] = lin(next(keys), num_feature_xd, num_feature_xd)
    p["gcn2_w"], p["gcn2_b"] = lin(next(keys), num_feature_xd, num_feature_xd * 2)
    p["gcn3_w"], p["gcn3_b"] = lin(next(keys), num_feature_xd * 2, num_feature_xd * 4)
    p["fc_g1_w"], p["fc_g1_b"] = lin(next(keys), 546, 546 * 2)
    p["fc_g2_w"], p["fc_g2_b"] = lin(next(keys), 546 * 2, output_dim)
    p["embed"] = jax.random.normal(next(keys), (num_feature_xt + 1, embed_dim),
                                   jnp.float32) * 0.1
    p["fc_s1_w"], p["fc_s1_b"] = lin(next(keys), 384, 384 * 2)
    p["fc_s2_w"], p["fc_s2_b"] = lin(next(keys), 384 * 2, output_dim)
    p["cnn1_w"] = jax.random.normal(next(keys), (128, 256, 3), jnp.float32) / jnp.sqrt(256 * 3)
    p["cnn1_b"] = jnp.zeros((128,), jnp.float32) + 0.01
    p["cnn2_w"] = jax.random.normal(next(keys), (128, 128, 3), jnp.float32) / jnp.sqrt(128 * 3)
    p["cnn2_b"] = jnp.zeros((128,), jnp.float32) + 0.01
    p["cnn3_w"] = jax.random.normal(next(keys), (128, 128, 3), jnp.float32) / jnp.sqrt(128 * 3)
    p["cnn3_b"] = jnp.zeros((128,), jnp.float32) + 0.01
    p["fc1_w"], p["fc1_b"] = lin(next(keys), 2 * output_dim, 1024)
    p["fc2_w"], p["fc2_b"] = lin(next(keys), 1024, 512)
    p["out_w"], p["out_b"] = lin(next(keys), 512, 1)
    return p


def _pad2(w, rows, cols):
    return jnp.zeros((rows, cols), jnp.float32).at[:w.shape[0], :w.shape[1]].set(w)


def _pad1(b, n):
    return jnp.zeros((n,), jnp.float32).at[:b.shape[0]].set(b)


def prepare_params(p):
    bf = jnp.bfloat16
    q = {}
    # GCN weights padded to 128-lane multiples (78->128, 156->256, 312->384).
    q["gcn1_w"] = _pad2(p["gcn1_w"], 128, 128).astype(bf)
    q["gcn1_b"] = _pad1(p["gcn1_b"], 128).reshape(1, 128)
    q["gcn2_w"] = _pad2(p["gcn2_w"], 128, 256).astype(bf)
    q["gcn2_b"] = _pad1(p["gcn2_b"], 256).reshape(1, 256)
    q["gcn3_w"] = _pad2(p["gcn3_w"], 256, 384).astype(bf)
    q["gcn3_b"] = _pad1(p["gcn3_b"], 384).reshape(1, 384)
    # fc_g1: remap the 546 = 78|156|312 concat rows onto the padded
    # 768 = 128|256|384 layout; pad the 1092 output lanes to 1152.
    g1 = jnp.zeros((768, 1152), jnp.float32)
    g1 = g1.at[0:78, :1092].set(p["fc_g1_w"][0:78])
    g1 = g1.at[128:284, :1092].set(p["fc_g1_w"][78:234])
    g1 = g1.at[384:696, :1092].set(p["fc_g1_w"][234:546])
    q["fc_g1_w"] = g1.astype(bf)
    q["fc_g1_b"] = _pad1(p["fc_g1_b"], 1152).reshape(1, 1152)
    q["fc_g2_w"] = _pad2(p["fc_g2_w"], 1152, 128).astype(bf)
    q["fc_g2_b"] = p["fc_g2_b"].reshape(1, 128)
    # Protein embedding table padded 26 -> 128 rows (one-hot matmul lookup).
    vocab = p["embed"].shape[0]
    q["embed_pad"] = (jnp.zeros((128, 256), jnp.float32)
                      .at[:vocab, :].set(p["embed"]).astype(bf))
    # Conv weights [Cout, Cin, K] -> [K, Cin, Cout].
    for i in (1, 2, 3):
        q[f"cnn{i}_w"] = jnp.transpose(p[f"cnn{i}_w"], (2, 1, 0)).astype(bf)
        q[f"cnn{i}_b"] = p[f"cnn{i}_b"].reshape(1, -1)
    q["fc_s1_w"] = p["fc_s1_w"].astype(bf)
    q["fc_s1_b"] = p["fc_s1_b"].reshape(1, -1)
    q["fc_s2_w"] = p["fc_s2_w"].astype(bf)
    q["fc_s2_b"] = p["fc_s2_b"].reshape(1, -1)
    q["fc1_w"] = p["fc1_w"].astype(bf)
    q["fc1_b"] = p["fc1_b"].reshape(1, -1)
    q["fc2_w"] = p["fc2_w"].astype(bf)
    q["fc2_b"] = p["fc2_b"].reshape(1, -1)
    # out: Linear(512, 1) -> pad output lanes 1->128 so the store is lane-dense.
    q["out_w"] = _pad2(p["out_w"], 512, 128).astype(bf)
    q["out_b"] = _pad1(p["out_b"], 128).reshape(1, 128)
    return q


# ----------------------------------------------------------------------------
# Forward pass (eval mode: dropout = identity)
# ----------------------------------------------------------------------------
def gcnnet_forward(q, x, edge_index, batch, target, num_graphs):
    n_nodes, n_feat = x.shape
    seq_len = target.shape[1]
    Np = _round_up(n_nodes, 128)            # node axis (M + lane dim of A_hat)
    Bp = _round_up(max(num_graphs, 1), 8)   # padded graph/protein batch

    # Per-graph node offsets/counts (host side; PyG batching => nodes sorted
    # by graph id).
    batch_np = np.asarray(batch)
    assert np.all(np.diff(batch_np) >= 0), "nodes must be sorted by graph id"
    counts = np.bincount(batch_np, minlength=num_graphs).astype(np.int32)
    offsets = np.zeros(num_graphs, np.int32)
    offsets[1:] = np.cumsum(counts)[:-1]
    max_nodes = _round_up(int(counts.max()), 8)
    offs_p = jnp.zeros((Bp,), jnp.int32).at[:num_graphs].set(jnp.asarray(offsets))
    cnts_p = jnp.zeros((Bp,), jnp.int32).at[:num_graphs].set(jnp.asarray(counts))

    # ---- protein branch (kernel 1) ----
    target_p = jnp.zeros((Bp, seq_len), jnp.int32).at[:num_graphs].set(target)
    ids_flat = target_p.reshape(Bp * seq_len, 1)
    seq_cat = protein_branch(ids_flat, q, seq_len, Bp)                # [Bp, 384]

    # ---- graph branch + fused FC head (kernel 2) ----
    a_hat = normalized_adjacency(edge_index, n_nodes)
    a_hat_p = (jnp.zeros((Np, Np), jnp.float32)
               .at[:n_nodes, :n_nodes].set(a_hat).astype(jnp.bfloat16))
    x_p = (jnp.zeros((Np, 128), jnp.float32)
           .at[:n_nodes, :n_feat].set(x).astype(jnp.bfloat16))
    o = graph_and_head(offs_p, cnts_p, a_hat_p, x_p, seq_cat, q,
                       num_graphs, Bp, max_nodes)                     # [Bp, 128]
    return o[:num_graphs, :1]


# ----------------------------------------------------------------------------
# Pure-JAX f32 reference (for a tolerance check; kernels use bf16 MXU operands)
# ----------------------------------------------------------------------------
def reference_forward(p, x, edge_index, batch, target, num_graphs):
    n_nodes = x.shape[0]
    a_hat = normalized_adjacency(edge_index, n_nodes)

    def gcn(h, w, b):
        return jax.nn.relu(a_hat @ (h @ w) + b)

    h1 = gcn(x, p["gcn1_w"], p["gcn1_b"])
    h2 = gcn(h1, p["gcn2_w"], p["gcn2_b"])
    h3 = gcn(h2, p["gcn3_w"], p["gcn3_b"])
    concat = jnp.concatenate([h1, h2, h3], axis=1)                    # [N, 546]

    batch_np = np.asarray(batch)
    counts = np.bincount(batch_np, minlength=num_graphs)
    offs = np.zeros(num_graphs, np.int64)
    offs[1:] = np.cumsum(counts)[:-1]
    pooled = jnp.stack([jnp.max(concat[int(o):int(o) + int(c)], axis=0)
                        for o, c in zip(offs, counts)], axis=0)       # [B, 546]

    xg = jax.nn.relu(pooled @ p["fc_g1_w"] + p["fc_g1_b"])
    xg = xg @ p["fc_g2_w"] + p["fc_g2_b"]

    emb = p["embed"][target]                                          # [B, L, 256]
    L = target.shape[1]

    def conv_relu(h, w, b):                                           # w: [Cout, Cin, 3]
        hp = jnp.pad(h, ((0, 0), (1, 1), (0, 0)))
        out = sum(jnp.einsum("blc,oc->blo", hp[:, k:k + L, :], w[:, :, k])
                  for k in range(3))
        return jax.nn.relu(out + b[None, None, :])

    c1 = conv_relu(emb, p["cnn1_w"], p["cnn1_b"])
    c2 = conv_relu(c1, p["cnn2_w"], p["cnn2_b"])
    c3 = conv_relu(c2, p["cnn3_w"], p["cnn3_b"])
    seq = jnp.concatenate([c1.max(axis=1), c2.max(axis=1), c3.max(axis=1)],
                          axis=1)                                     # [B, 384]

    xt = seq @ p["fc_s1_w"] + p["fc_s1_b"]
    xt = xt @ p["fc_s2_w"] + p["fc_s2_b"]
    xc = jnp.concatenate([xg, xt], axis=1)
    h = jax.nn.relu(xc @ p["fc1_w"] + p["fc1_b"])
    h = jax.nn.relu(h @ p["fc2_w"] + p["fc2_b"])
    return h @ p["out_w"] + p["out_b"]


# ----------------------------------------------------------------------------
if __name__ == "__main__":
    key = jax.random.PRNGKey(0)
    k_param, k_x, k_t = jax.random.split(key, 3)

    p = init_params(k_param)
    q = prepare_params(p)

    # Synthetic mini-batch: 2 graphs, 8 nodes each (N=16), protein length L=8.
    num_graphs = 2
    nodes_per_graph = 8
    n_nodes = num_graphs * nodes_per_graph
    seq_len = 8

    x = jax.random.normal(k_x, (n_nodes, 78), jnp.float32)

    # Undirected ring within each graph.
    src, dst = [], []
    for g in range(num_graphs):
        base = g * nodes_per_graph
        for i in range(nodes_per_graph):
            j = (i + 1) % nodes_per_graph
            src += [base + i, base + j]
            dst += [base + j, base + i]
    edge_index = jnp.array([src, dst], dtype=jnp.int32)

    batch = jnp.repeat(jnp.arange(num_graphs, dtype=jnp.int32), nodes_per_graph)
    target = jax.random.randint(k_t, (num_graphs, seq_len), 0, 26, dtype=jnp.int32)

    out = gcnnet_forward(q, x, edge_index, batch, target, num_graphs)
    out = jax.block_until_ready(out)
    assert out.shape == (num_graphs, 1), out.shape

    # Loose tolerance: kernels run bf16 MXU operands vs the f32 reference.
    ref = jax.block_until_ready(
        reference_forward(p, x, edge_index, batch, target, num_graphs))
    err = float(jnp.max(jnp.abs(out - ref)))
    scale = float(jnp.max(jnp.abs(ref)))
    assert err <= 0.05 + 0.05 * scale, (err, scale)

    print("KERNEL_OK")
</pallas_src>

<mosaic_0001>
module attributes {stable_mosaic.version = 11 : i64} {
  func.func @_protein_kernel(%arg0: i32, %arg1: memref<64x1xi32, #tpu.memory_space<vmem>>, %arg2: memref<128x256xbf16, #tpu.memory_space<vmem>>, %arg3: memref<3x256x128xbf16, #tpu.memory_space<vmem>>, %arg4: memref<1x128xf32, #tpu.memory_space<vmem>>, %arg5: memref<3x128x128xbf16, #tpu.memory_space<vmem>>, %arg6: memref<1x128xf32, #tpu.memory_space<vmem>>, %arg7: memref<3x128x128xbf16, #tpu.memory_space<vmem>>, %arg8: memref<1x128xf32, #tpu.memory_space<vmem>>, %arg9: memref<8x384xf32, #tpu.memory_space<vmem>>) attributes {dimension_semantics = [#tpu.dimension_semantics<parallel>], iteration_bounds = array<i64: 1>, scalar_prefetch = 0 : i64, scratch_operands = 0 : i64, tpu.core_type = #tpu.core_type<tc>, window_params = [{transform_indices = @transform_0, window_bounds = array<i64: 64, 1>}, {pipeline_mode = #tpu.pipeline_mode<synchronous>, transform_indices = @transform_1, window_bounds = array<i64: 128, 256>}, {pipeline_mode = #tpu.pipeline_mode<synchronous>, transform_indices = @transform_2, window_bounds = array<i64: 3, 256, 128>}, {pipeline_mode = #tpu.pipeline_mode<synchronous>, transform_indices = @transform_3, window_bounds = array<i64: 1, 128>}, {pipeline_mode = #tpu.pipeline_mode<synchronous>, transform_indices = @transform_4, window_bounds = array<i64: 3, 128, 128>}, {pipeline_mode = #tpu.pipeline_mode<synchronous>, transform_indices = @transform_5, window_bounds = array<i64: 1, 128>}, {pipeline_mode = #tpu.pipeline_mode<synchronous>, transform_indices = @transform_6, window_bounds = array<i64: 3, 128, 128>}, {pipeline_mode = #tpu.pipeline_mode<synchronous>, transform_indices = @transform_7, window_bounds = array<i64: 1, 128>}, {transform_indices = @transform_8, window_bounds = array<i64: 8, 384>}]} {
    %c0 = arith.constant 0 : index
    %c0_0 = arith.constant 0 : index
    %0 = vector.load %arg1[%c0, %c0_0] : memref<64x1xi32, #tpu.memory_space<vmem>>, vector<64x1xi32>
    %1 = tpu.iota {dimensions = array<i32: 1>} : vector<64x128xi32>
    %2 = vector.broadcast %0 : vector<64x1xi32> to vector<64x128xi32>
    %3 = arith.cmpi eq, %1, %2 : vector<64x128xi32>
    %4 = arith.extui %3 : vector<64x128xi1> to vector<64x128xi32>
    %5 = arith.sitofp %4 : vector<64x128xi32> to vector<64x128xf32>
    %6 = arith.truncf %5 : vector<64x128xf32> to vector<64x128xbf16>
    %c0_1 = arith.constant 0 : index
    %c0_2 = arith.constant 0 : index
    %7 = vector.load %arg2[%c0_1, %c0_2] : memref<128x256xbf16, #tpu.memory_space<vmem>>, vector<128x256xbf16>
    %cst = arith.constant dense<0.000000e+00> : vector<64x256xf32>
    %8 = tpu.matmul %6, %7, %cst {dimension_numbers = #tpu.dot_dimension_numbers<[1], [0], [0], [1], [0, 0, 1, 1], [], []>} : vector<64x128xbf16>, vector<128x256xbf16>, vector<64x256xf32> -> vector<64x256xf32>
    %9 = arith.truncf %8 : vector<64x256xf32> to vector<64x256xbf16>
    %10 = tpu.iota {dimensions = array<i32: 1>} : vector<8x8x128xi32>
    %11 = vector.shape_cast %10 : vector<8x8x128xi32> to vector<64x128xi32>
    %c0_i32 = arith.constant 0 : i32
    %12 = vector.broadcast %c0_i32 : i32 to vector<64x128xi32>
    %13 = arith.cmpi ne, %11, %12 : vector<64x128xi32>
    %c7_i32 = arith.constant 7 : i32
    %14 = vector.broadcast %c7_i32 : i32 to vector<64x128xi32>
    %15 = arith.cmpi ne, %11, %14 : vector<64x128xi32>
    %c0_3 = arith.constant 0 : index
    %c0_4 = arith.constant 0 : index
    %c0_5 = arith.constant 0 : index
    %16 = vector.load %arg3[%c0_3, %c0_4, %c0_5] : memref<3x256x128xbf16, #tpu.memory_space<vmem>>, vector<1x256x128xbf16>
    %17 = vector.shape_cast %16 : vector<1x256x128xbf16> to vector<256x128xbf16>
    %cst_6 = arith.constant dense<0.000000e+00> : vector<64x128xf32>
    %18 = tpu.matmul %9, %17, %cst_6 {dimension_numbers = #tpu.dot_dimension_numbers<[1], [0], [0], [1], [0, 0, 1, 1], [], []>} : vector<64x256xbf16>, vector<256x128xbf16>, vector<64x128xf32> -> vector<64x128xf32>
    %c1 = arith.constant 1 : index
    %c0_7 = arith.constant 0 : index
    %c0_8 = arith.constant 0 : index
    %19 = vector.load %arg3[%c1, %c0_7, %c0_8] : memref<3x256x128xbf16, #tpu.memory_space<vmem>>, vector<1x256x128xbf16>
    %20 = vector.shape_cast %19 : vector<1x256x128xbf16> to vector<256x128xbf16>
    %cst_9 = arith.constant dense<0.000000e+00> : vector<64x128xf32>
    %21 = tpu.matmul %9, %20, %cst_9 {dimension_numbers = #tpu.dot_dimension_numbers<[1], [0], [0], [1], [0, 0, 1, 1], [], []>} : vector<64x256xbf16>, vector<256x128xbf16>, vector<64x128xf32> -> vector<64x128xf32>
    %c2 = arith.constant 2 : index
    %c0_10 = arith.constant 0 : index
    %c0_11 = arith.constant 0 : index
    %22 = vector.load %arg3[%c2, %c0_10, %c0_11] : memref<3x256x128xbf16, #tpu.memory_space<vmem>>, vector<1x256x128xbf16>
    %23 = vector.shape_cast %22 : vector<1x256x128xbf16> to vector<256x128xbf16>
    %cst_12 = arith.constant dense<0.000000e+00> : vector<64x128xf32>
    %24 = tpu.matmul %9, %23, %cst_12 {dimension_numbers = #tpu.dot_dimension_numbers<[1], [0], [0], [1], [0, 0, 1, 1], [], []>} : vector<64x256xbf16>, vector<256x128xbf16>, vector<64x128xf32> -> vector<64x128xf32>
    %c1_i32 = arith.constant 1 : i32
    %25 = tpu.dynamic_rotate %18 by %c1_i32 dim 0 : vector<64x128xf32>, i32 -> vector<64x128xf32>
    %cst_13 = arith.constant 0.000000e+00 : f32
    %26 = vector.broadcast %cst_13 : f32 to vector<64x128xf32>
    %27 = arith.select %13, %25, %26 : vector<64x128xi1>, vector<64x128xf32>
    %c63_i32 = arith.constant 63 : i32
    %28 = tpu.dynamic_rotate %24 by %c63_i32 dim 0 : vector<64x128xf32>, i32 -> vector<64x128xf32>
    %cst_14 = arith.constant 0.000000e+00 : f32
    %29 = vector.broadcast %cst_14 : f32 to vector<64x128xf32>
    %30 = arith.select %15, %28, %29 : vector<64x128xi1>, vector<64x128xf32>
    %31 = arith.addf %27, %21 : vector<64x128xf32>
    %32 = arith.addf %31, %30 : vector<64x128xf32>
    %c0_15 = arith.constant 0 : index
    %c0_16 = arith.constant 0 : index
    %33 = vector.load %arg4[%c0_15, %c0_16] : memref<1x128xf32, #tpu.memory_space<vmem>>, vector<1x128xf32>
    %34 = vector.broadcast %33 : vector<1x128xf32> to vector<64x128xf32>
    %35 = arith.addf %32, %34 : vector<64x128xf32>
    %cst_17 = arith.constant 0.000000e+00 : f32
    %36 = vector.broadcast %cst_17 : f32 to vector<64x128xf32>
    %37 = arith.maximumf %35, %36 : vector<64x128xf32>
    %38 = arith.truncf %37 : vector<64x128xf32> to vector<64x128xbf16>
    %c0_18 = arith.constant 0 : index
    %c0_19 = arith.constant 0 : index
    %c0_20 = arith.constant 0 : index
    %39 = vector.load %arg5[%c0_18, %c0_19, %c0_20] : memref<3x128x128xbf16, #tpu.memory_space<vmem>>, vector<1x128x128xbf16>
    %40 = vector.shape_cast %39 : vector<1x128x128xbf16> to vector<128x128xbf16>
    %cst_21 = arith.constant dense<0.000000e+00> : vector<64x128xf32>
    %41 = tpu.matmul %38, %40, %cst_21 {dimension_numbers = #tpu.dot_dimension_numbers<[1], [0], [0], [1], [0, 0, 1, 1], [], []>} : vector<64x128xbf16>, vector<128x128xbf16>, vector<64x128xf32> -> vector<64x128xf32>
    %c1_22 = arith.constant 1 : index
    %c0_23 = arith.constant 0 : index
    %c0_24 = arith.constant 0 : index
    %42 = vector.load %arg5[%c1_22, %c0_23, %c0_24] : memref<3x128x128xbf16, #tpu.memory_space<vmem>>, vector<1x128x128xbf16>
    %43 = vector.shape_cast %42 : vector<1x128x128xbf16> to vector<128x128xbf16>
    %cst_25 = arith.constant dense<0.000000e+00> : vector<64x128xf32>
    %44 = tpu.matmul %38, %43, %cst_25 {dimension_numbers = #tpu.dot_dimension_numbers<[1], [0], [0], [1], [0, 0, 1, 1], [], []>} : vector<64x128xbf16>, vector<128x128xbf16>, vector<64x128xf32> -> vector<64x128xf32>
    %c2_26 = arith.constant 2 : index
    %c0_27 = arith.constant 0 : index
    %c0_28 = arith.constant 0 : index
    %45 = vector.load %arg5[%c2_26, %c0_27, %c0_28] : memref<3x128x128xbf16, #tpu.memory_space<vmem>>, vector<1x128x128xbf16>
    %46 = vector.shape_cast %45 : vector<1x128x128xbf16> to vector<128x128xbf16>
    %cst_29 = arith.constant dense<0.000000e+00> : vector<64x128xf32>
    %47 = tpu.matmul %38, %46, %cst_29 {dimension_numbers = #tpu.dot_dimension_numbers<[1], [0], [0], [1], [0, 0, 1, 1], [], []>} : vector<64x128xbf16>, vector<128x128xbf16>, vector<64x128xf32> -> vector<64x128xf32>
    %c1_i32_30 = arith.constant 1 : i32
    %48 = tpu.dynamic_rotate %41 by %c1_i32_30 dim 0 : vector<64x128xf32>, i32 -> vector<64x128xf32>
    %cst_31 = arith.constant 0.000000e+00 : f32
    %49 = vector.broadcast %cst_31 : f32 to vector<64x128xf32>
    %50 = arith.select %13, %48, %49 : vector<64x128xi1>, vector<64x128xf32>
    %c63_i32_32 = arith.constant 63 : i32
    %51 = tpu.dynamic_rotate %47 by %c63_i32_32 dim 0 : vector<64x128xf32>, i32 -> vector<64x128xf32>
    %cst_33 = arith.constant 0.000000e+00 : f32
    %52 = vector.broadcast %cst_33 : f32 to vector<64x128xf32>
    %53 = arith.select %15, %51, %52 : vector<64x128xi1>, vector<64x128xf32>
    %54 = arith.addf %50, %44 : vector<64x128xf32>
    %55 = arith.addf %54, %53 : vector<64x128xf32>
    %c0_34 = arith.constant 0 : index
    %c0_35 = arith.constant 0 : index
    %56 = vector.load %arg6[%c0_34, %c0_35] : memref<1x128xf32, #tpu.memory_space<vmem>>, vector<1x128xf32>
    %57 = vector.broadcast %56 : vector<1x128xf32> to vector<64x128xf32>
    %58 = arith.addf %55, %57 : vector<64x128xf32>
    %cst_36 = arith.constant 0.000000e+00 : f32
    %59 = vector.broadcast %cst_36 : f32 to vector<64x128xf32>
    %60 = arith.maximumf %58, %59 : vector<64x128xf32>
    %61 = arith.truncf %60 : vector<64x128xf32> to vector<64x128xbf16>
    %c0_37 = arith.constant 0 : index
    %c0_38 = arith.constant 0 : index
    %c0_39 = arith.constant 0 : index
    %62 = vector.load %arg7[%c0_37, %c0_38, %c0_39] : memref<3x128x128xbf16, #tpu.memory_space<vmem>>, vector<1x128x128xbf16>
    %63 = vector.shape_cast %62 : vector<1x128x128xbf16> to vector<128x128xbf16>
    %cst_40 = arith.constant dense<0.000000e+00> : vector<64x128xf32>
    %64 = tpu.matmul %61, %63, %cst_40 {dimension_numbers = #tpu.dot_dimension_numbers<[1], [0], [0], [1], [0, 0, 1, 1], [], []>} : vector<64x128xbf16>, vector<128x128xbf16>, vector<64x128xf32> -> vector<64x128xf32>
    %c1_41 = arith.constant 1 : index
    %c0_42 = arith.constant 0 : index
    %c0_43 = arith.constant 0 : index
    %65 = vector.load %arg7[%c1_41, %c0_42, %c0_43] : memref<3x128x128xbf16, #tpu.memory_space<vmem>>, vector<1x128x128xbf16>
    %66 = vector.shape_cast %65 : vector<1x128x128xbf16> to vector<128x128xbf16>
    %cst_44 = arith.constant dense<0.000000e+00> : vector<64x128xf32>
    %67 = tpu.matmul %61, %66, %cst_44 {dimension_numbers = #tpu.dot_dimension_numbers<[1], [0], [0], [1], [0, 0, 1, 1], [], []>} : vector<64x128xbf16>, vector<128x128xbf16>, vector<64x128xf32> -> vector<64x128xf32>
    %c2_45 = arith.constant 2 : index
    %c0_46 = arith.constant 0 : index
    %c0_47 = arith.constant 0 : index
    %68 = vector.load %arg7[%c2_45, %c0_46, %c0_47] : memref<3x128x128xbf16, #tpu.memory_space<vmem>>, vector<1x128x128xbf16>
    %69 = vector.shape_cast %68 : vector<1x128x128xbf16> to vector<128x128xbf16>
    %cst_48 = arith.constant dense<0.000000e+00> : vector<64x128xf32>
    %70 = tpu.matmul %61, %69, %cst_48 {dimension_numbers = #tpu.dot_dimension_numbers<[1], [0], [0], [1], [0, 0, 1, 1], [], []>} : vector<64x128xbf16>, vector<128x128xbf16>, vector<64x128xf32> -> vector<64x128xf32>
    %c1_i32_49 = arith.constant 1 : i32
    %71 = tpu.dynamic_rotate %64 by %c1_i32_49 dim 0 : vector<64x128xf32>, i32 -> vector<64x128xf32>
    %cst_50 = arith.constant 0.000000e+00 : f32
    %72 = vector.broadcast %cst_50 : f32 to vector<64x128xf32>
    %73 = arith.select %13, %71, %72 : vector<64x128xi1>, vector<64x128xf32>
    %c63_i32_51 = arith.constant 63 : i32
    %74 = tpu.dynamic_rotate %70 by %c63_i32_51 dim 0 : vector<64x128xf32>, i32 -> vector<64x128xf32>
    %cst_52 = arith.constant 0.000000e+00 : f32
    %75 = vector.broadcast %cst_52 : f32 to vector<64x128xf32>
    %76 = arith.select %15, %74, %75 : vector<64x128xi1>, vector<64x128xf32>
    %77 = arith.addf %73, %67 : vector<64x128xf32>
    %78 = arith.addf %77, %76 : vector<64x128xf32>
    %c0_53 = arith.constant 0 : index
    %c0_54 = arith.constant 0 : index
    %79 = vector.load %arg8[%c0_53, %c0_54] : memref<1x128xf32, #tpu.memory_space<vmem>>, vector<1x128xf32>
    %80 = vector.broadcast %79 : vector<1x128xf32> to vector<64x128xf32>
    %81 = arith.addf %78, %80 : vector<64x128xf32>
    %cst_55 = arith.constant 0.000000e+00 : f32
    %82 = vector.broadcast %cst_55 : f32 to vector<64x128xf32>
    %83 = arith.maximumf %81, %82 : vector<64x128xf32>
    %84 = vector.shape_cast %37 : vector<64x128xf32> to vector<8x8x128xf32>
    %cst_56 = arith.constant dense<0xFF800000> : vector<8x128xf32>
    %85 = vector.multi_reduction <maximumf>, %84, %cst_56 [1] : vector<8x8x128xf32> to vector<8x128xf32>
    %c0_57 = arith.constant 0 : index
    %c0_58 = arith.constant 0 : index
    %86 = vector.load %arg9[%c0_57, %c0_58] : memref<8x384xf32, #tpu.memory_space<vmem>>, vector<8x128xf32>
    tpu.vector_store %arg9[%c0_57, %c0_58], %85 {strides = array<i32>} : memref<8x384xf32, #tpu.memory_space<vmem>>, vector<8x128xf32>,
    %87 = vector.shape_cast %60 : vector<64x128xf32> to vector<8x8x128xf32>
    %cst_59 = arith.constant dense<0xFF800000> : vector<8x128xf32>
    %88 = vector.multi_reduction <maximumf>, %87, %cst_59 [1] : vector<8x8x128xf32> to vector<8x128xf32>
    %c0_60 = arith.constant 0 : index
    %c128 = arith.constant 128 : index
    %89 = vector.load %arg9[%c0_60, %c128] : memref<8x384xf32, #tpu.memory_space<vmem>>, vector<8x128xf32>
    tpu.vector_store %arg9[%c0_60, %c128], %88 {strides = array<i32>} : memref<8x384xf32, #tpu.memory_space<vmem>>, vector<8x128xf32>,
    %90 = vector.shape_cast %83 : vector<64x128xf32> to vector<8x8x128xf32>
    %cst_61 = arith.constant dense<0xFF800000> : vector<8x128xf32>
    %91 = vector.multi_reduction <maximumf>, %90, %cst_61 [1] : vector<8x8x128xf32> to vector<8x128xf32>
    %c0_62 = arith.constant 0 : index
    %c256 = arith.constant 256 : index
    %92 = vector.load %arg9[%c0_62, %c256] : memref<8x384xf32, #tpu.memory_space<vmem>>, vector<8x128xf32>
    tpu.vector_store %arg9[%c0_62, %c256], %91 {strides = array<i32>} : memref<8x384xf32, #tpu.memory_space<vmem>>, vector<8x128xf32>,
    return
  }
  func.func @transform_0(%arg0: i32) -> (i32, i32) {
    %c0_i32 = arith.constant 0 : i32
    %c0_i32_0 = arith.constant 0 : i32
    return %arg0, %c0_i32 : i32, i32
  }
  func.func @transform_1(%arg0: i32) -> (i32, i32) {
    %c0_i32 = arith.constant 0 : i32
    %c0_i32_0 = arith.constant 0 : i32
    %c0_i32_1 = arith.constant 0 : i32
    return %c0_i32, %c0_i32_0 : i32, i32
  }
  func.func @transform_2(%arg0: i32) -> (i32, i32, i32) {
    %c0_i32 = arith.constant 0 : i32
    %c0_i32_0 = arith.constant 0 : i32
    %c0_i32_1 = arith.constant 0 : i32
    %c0_i32_2 = arith.constant 0 : i32
    return %c0_i32, %c0_i32_0, %c0_i32_1 : i32, i32, i32
  }
  func.func @transform_3(%arg0: i32) -> (i32, i32) {
    %c0_i32 = arith.constant 0 : i32
    %c0_i32_0 = arith.constant 0 : i32
    %c0_i32_1 = arith.constant 0 : i32
    return %c0_i32, %c0_i32_0 : i32, i32
  }
  func.func @transform_4(%arg0: i32) -> (i32, i32, i32) {
    %c0_i32 = arith.constant 0 : i32
    %c0_i32_0 = arith.constant 0 : i32
    %c0_i32_1 = arith.constant 0 : i32
    %c0_i32_2 = arith.constant 0 : i32
    return %c0_i32, %c0_i32_0, %c0_i32_1 : i32, i32, i32
  }
  func.func @transform_5(%arg0: i32) -> (i32, i32) {
    %c0_i32 = arith.constant 0 : i32
    %c0_i32_0 = arith.constant 0 : i32
    %c0_i32_1 = arith.constant 0 : i32
    return %c0_i32, %c0_i32_0 : i32, i32
  }
  func.func @transform_6(%arg0: i32) -> (i32, i32, i32) {
    %c0_i32 = arith.constant 0 : i32
    %c0_i32_0 = arith.constant 0 : i32
    %c0_i32_1 = arith.constant 0 : i32
    %c0_i32_2 = arith.constant 0 : i32
    return %c0_i32, %c0_i32_0, %c0_i32_1 : i32, i32, i32
  }
  func.func @transform_7(%arg0: i32) -> (i32, i32) {
    %c0_i32 = arith.constant 0 : i32
    %c0_i32_0 = arith.constant 0 : i32
    %c0_i32_1 = arith.constant 0 : i32
    return %c0_i32, %c0_i32_0 : i32, i32
  }
  func.func @transform_8(%arg0: i32) -> (i32, i32) {
    %c0_i32 = arith.constant 0 : i32
    %c0_i32_0 = arith.constant 0 : i32
    return %arg0, %c0_i32 : i32, i32
  }
}

</mosaic_0001>

<bundles_post_ra>
// kernel: tpu_custom_call.1
= control target key start
LH: loop header
LB: loop body
LE: loop exit
PB: predicated region body
PF: predicated region fallthrough
CT: control target
= control target key end

     0   :  { %13 = vsyncpa [#allocation3], 0  ;;  %s3393_s0 = inlined_call_operand.vmem [shape: s32[64,1], index: 0, kind: input, shape index: {}]   ;;  %s3394_s1 = inlined_call_operand.hbm [shape: bf16[128,256], index: 1, kind: input, shape index: {}]   ;;  %s3395_s2 = inlined_call_operand.hbm [shape: bf16[3,256,128], index: 2, kind: input, shape index: {}]   ;;  %s3396_s3 = inlined_call_operand.vmem [shape: f32[1,128], index: 3, kind: input, shape index: {}]   ;;  %s3397_s4 = inlined_call_operand.hbm [shape: bf16[3,128,128], index: 4, kind: input, shape index: {}]   ;;  %s3398_s5 = inlined_call_operand.vmem [shape: f32[1,128], index: 5, kind: input, shape index: {}]   ;;  %s3399_s6 = inlined_call_operand.hbm [shape: bf16[3,128,128], index: 6, kind: input, shape index: {}]   ;;  %s3400_s7 = inlined_call_operand.vmem [shape: f32[1,128], index: 7, kind: input, shape index: {}]   ;;  %s3401_s8 = inlined_call_operand.hbm [shape: f32[8,384], index: 8, kind: output, shape index: {}]  }
   0x1   :  { %14 = vsyncpa [#allocation6], 0 }
   0x2   :  { %15 = vsyncpa [#allocation9], 0 }
   0x3   :  { %16 = vsyncpa [#allocation4], 0  ;;  %s2896_s27 = smov [#allocation5]   ;;  %s2778_s9 = scalar_lea.hbm %s3395_s2, 6144 }
   0x4   :  { %s36_s28 = sshll.u32 %s2896_s27, 4  ;;  %p2779_p0 = scmp.ne.s32.totalorder %s3395_s2, %s2778_s9  ;;  %s37_s28 = int_to_ptr.vmem [resolvable:$true] %s36_s28 }
   0x5   :  { %p2782_p1 = scmp.lt.u32.totalorder %s2778_s9, %s3395_s2 }
   0x7   :  { %p2784_p2 = pnand %p2782_p1, %p2779_p0 }
   0x9   :  { %2787 = shalt.err (!%p2784_p2)
}
   0xa   :  { %s2788_s14 = scalar_lea.vmem %s37_s28, 6144  ;;  %p2793_p4 = scmp.lt.s32.totalorder %s37_s28, %s37_s28 }
   0xb   :  { %p2789_p3 = scmp.ne.s32.totalorder %s37_s28, %s2788_s14  ;;  %p2794_p5 = scmp.lt.s32.totalorder %s2788_s14, %s2788_s14 }
   0xd   :  { %p2795_p6 = por %p2794_p5, %p2793_p4 }
   0xf   :  { %p2796_p7 = pnand %p2795_p6, %p2789_p3 }
  0x11   :  { %2799 = shalt.err (!%p2796_p7)
}
  0x12   :  { %s2897_s15 = smov 64   ;;  %s2898_s16 = smov 4  }
  0x13   :  { %42 = dma.hbm_to_vmem [thread:$0]  %s3395_s2, 6144, %s37_s28, [#allocation6], %s2897_s15, %s2897_s15, %s2898_s16  }
  0x14   :  { %s2899_s19 = smov [#allocation2]   ;;  %s2800_s23 = scalar_lea.hbm %s3394_s1, 2048 }
  0x15   :  { %s24_s20 = sshll.u32 %s2899_s19, 4  ;;  %p2801_p8 = scmp.ne.s32.totalorder %s3394_s1, %s2800_s23  ;;  %s25_s20 = int_to_ptr.vmem [resolvable:$true] %s24_s20 }
  0x16   :  { %p2804_p9 = scmp.lt.u32.totalorder %s2800_s23, %s3394_s1 }
  0x18   :  { %p2806_p10 = pnand %p2804_p9, %p2801_p8 }
  0x1a   :  { %2809 = shalt.err (!%p2806_p10)
}
  0x1b   :  { %s2810_s29 = scalar_lea.vmem %s25_s20, 2048  ;;  %p2815_p12 = scmp.lt.s32.totalorder %s25_s20, %s25_s20 }
  0x1c   :  { %p2811_p11 = scmp.ne.s32.totalorder %s25_s20, %s2810_s29  ;;  %p2816_p13 = scmp.lt.s32.totalorder %s2810_s29, %s2810_s29 }
  0x1e   :  { %p2817_p0 = por %p2816_p13, %p2815_p12 }
  0x20   :  { %p2818_p1 = pnand %p2817_p0, %p2811_p11 }
  0x22   :  { %2821 = shalt.err (!%p2818_p1)
}
  0x23   :  { %s2900_s2 = smov 128   ;;  %s2901_s28 = smov 8  }
  0x24   :  { %30 = dma.hbm_to_vmem [thread:$0]  %s3394_s1, 2048, %s25_s20, [#allocation3], %s2900_s2, %s2900_s2, %s2901_s28  }
  0x25   :  { %s2902_s10 = smov [#allocation7]   ;;  %s2903_s12 = smov [#allocation8]  }
  0x26   :  { %s50_s11 = sshll.u32 %s2902_s10, 4  ;;  %s64_s13 = sshll.u32 %s2903_s12, 4  ;;  %s51_s11 = int_to_ptr.vmem [resolvable:$true] %s50_s11  ;;  %s2979_s13 = int_to_ptr.vmem [resolvable:$true] %s64_s13 }
  0x27   :  { %s2822_s18 = scalar_lea.hbm %s3397_s4, 3072 }
  0x28   :  { %p2823_p2 = scmp.ne.s32.totalorder %s3397_s4, %s2822_s18  ;;  %p2826_p3 = scmp.lt.u32.totalorder %s2822_s18, %s3397_s4 }
  0x2a   :  { %p2828_p4 = pnand %p2826_p3, %p2823_p2 }
  0x2c   :  { %2831 = shalt.err (!%p2828_p4)
}
  0x2d   :  { %s2832_s1 = scalar_lea.vmem %s51_s11, 3072  ;;  %p2837_p6 = scmp.lt.s32.totalorder %s51_s11, %s51_s11 }
  0x2e   :  { %p2833_p5 = scmp.ne.s32.totalorder %s51_s11, %s2832_s1  ;;  %p2838_p7 = scmp.lt.s32.totalorder %s2832_s1, %s2832_s1 }
  0x30   :  { %p2839_p8 = por %p2838_p7, %p2837_p6 }
  0x32   :  { %p2840_p9 = pnand %p2839_p8, %p2833_p5 }
  0x34   :  { %2843 = shalt.err (!%p2840_p9)
}
  0x35   :  { %56 = dma.hbm_to_vmem [thread:$0]  %s3397_s4, 3072, %s51_s11, [#allocation6], %s2897_s15, %s2897_s15, %s2898_s16  }
  0x36   :  { %s2844_s27 = scalar_lea.hbm %s3399_s6, 3072 }
  0x37   :  { %p2845_p10 = scmp.ne.s32.totalorder %s3399_s6, %s2844_s27  ;;  %p2848_p11 = scmp.lt.u32.totalorder %s2844_s27, %s3399_s6 }
  0x39   :  { %p2850_p12 = pnand %p2848_p11, %p2845_p10 }
  0x3b   :  { %2853 = shalt.err (!%p2850_p12)
}
  0x3c   :  { %s2854_s9 = scalar_lea.vmem %s2979_s13, 3072  ;;  %p2859_p0 = scmp.lt.s32.totalorder %s2979_s13, %s2979_s13 }
  0x3d   :  { %p2855_p13 = scmp.ne.s32.totalorder %s2979_s13, %s2854_s9  ;;  %p2860_p1 = scmp.lt.s32.totalorder %s2854_s9, %s2854_s9 }
  0x3f   :  { %p2861_p2 = por %p2860_p1, %p2859_p0 }
  0x41   :  { %p2862_p3 = pnand %p2861_p2, %p2855_p13 }
  0x43   :  { %2865 = shalt.err (!%p2862_p3)
}
  0x44   :  { %70 = dma.hbm_to_vmem [thread:$0]  %s3399_s6, 3072, %s2979_s13, [#allocation9], %s2897_s15, %s2897_s15, %s2898_s16  }
  0x45   :  { %2888 = dma.done.wait [#allocation3], 2048  }
  0x46   :  { %2889 = vsyncadd [#allocation3], 4294965248 }
  0x47   :  { %2890 = dma.done.wait [#allocation6], 9216  }
  0x48   :  { %2891 = vsyncadd [#allocation6], 4294958080 }
  0x49   :  { %2892 = dma.done.wait [#allocation9], 3072  }
  0x4a   :  { %2893 = vsyncadd [#allocation9], 4294964224  ;;  %v2904_v0 = vmov 0   ;;  %v88_v1 = vld [vmem:[%s3393_s0 + $0x10] sm:$0xff]  ;;  %v86_v2 = vld [vmem:[%s3393_s0] sm:$0xff]  ;;  %v94_v40 = vlaneseq }
  0x4b   :  { %2657 = vset.pattern.permute.xlu1 %v2904_v0  ;;  %2656 = vset.pattern.permute.xlu0 %v2904_v0  ;;  %v89_v3 = vld [vmem:[%s3393_s0 + $0x18] sm:$0xff]  ;;  %v87_v4 = vld [vmem:[%s3393_s0 + $0x8] sm:$0xff]  ;;  %v90_v9 = vld [vmem:[%s3393_s0 + $0x20] sm:$0xff]  ;;  %v2905_v47 = vmov 1.0|1.0  }
  0x4c   :  { %276 = vmatprep.mubr.bf16.mxu0 %v2904_v0  ;;  %103 = vperm.xlu1 %2657, %v88_v1   ;;  %v2658_v5 = vld [vmem:[#allocation2 + $0x4] ss:$8 sps:$4 sm:$0xff]   ;;  %v2660_v6 = vld [vmem:[#allocation2] ss:$8 sps:$4 sm:$0xff]   ;;  %v2661_v7 = vld [vmem:[#allocation2 + $0x14] ss:$8 sps:$4 sm:$0xff]  }
  0x4d   :  { %97 = vperm.xlu0 %2656, %v86_v2   ;;  %v91_v8 = vld [vmem:[%s3393_s0 + $0x28] sm:$0xff]  ;;  %244 = vmatprep.subr.bf16.mxu0 %v2658_v5  ;;  %v2663_v10 = vld [vmem:[#allocation2 + $0x10] ss:$8 sps:$4 sm:$0xff]   ;;  %v2667_v15 = vld [vmem:[#allocation2 + $0x34] ss:$8 sps:$4 sm:$0xff]   ;;  %v95_v42 = vand.u32 127, %v94_v40 }
  0x4e   :  { %245 = vmatpush1.bf16.msra.mxu0 %v2660_v6  ;;  %v2664_v11 = vld [vmem:[#allocation2 + $0x24] ss:$8 sps:$4 sm:$0xff]   ;;  %v93_v12 = vld [vmem:[%s3393_s0 + $0x38] sm:$0xff]  ;;  %v92_v13 = vld [vmem:[%s3393_s0 + $0x30] sm:$0xff] }
  0x4f   :  { %246 = vmatprep.subr.bf16.mxu0 %v2661_v7  ;;  %v2666_v14 = vld [vmem:[#allocation2 + $0x20] ss:$8 sps:$4 sm:$0xff]   ;;  %v2669_v16 = vld [vmem:[#allocation2 + $0x30] ss:$8 sps:$4 sm:$0xff]   ;;  %v2670_v17 = vld [vmem:[#allocation2 + $0x44] ss:$8 sps:$4 sm:$0xff]  }
  0x50   :  { %106 = vperm.xlu1 %2657, %v89_v3   ;;  %v2672_v18 = vld [vmem:[#allocation2 + $0x40] ss:$8 sps:$4 sm:$0xff]   ;;  %v2673_v19 = vld [vmem:[#allocation2 + $0x54] ss:$8 sps:$4 sm:$0xff]   ;;  %v2675_v20 = vld [vmem:[#allocation2 + $0x50] ss:$8 sps:$4 sm:$0xff]  }
  0x51   :  { %100 = vperm.xlu0 %2656, %v87_v4   ;;  %v2676_v21 = vld [vmem:[#allocation2 + $0x64] ss:$8 sps:$4 sm:$0xff]   ;;  %v2678_v22 = vld [vmem:[#allocation2 + $0x60] ss:$8 sps:$4 sm:$0xff]   ;;  %v2679_v23 = vld [vmem:[#allocation2 + $0x74] ss:$8 sps:$4 sm:$0xff]  }
  0x52   :  { %247 = vmatpush1.bf16.msra.mxu0 %v2663_v10  ;;  %v2681_v24 = vld [vmem:[#allocation2 + $0x70] ss:$8 sps:$4 sm:$0xff]   ;;  %v2682_v25 = vld [vmem:[#allocation5 + $0x40] sm:$0xff]   ;;  %v2686_v28 = vld [vmem:[#allocation5 + $0x48] sm:$0xff]  }
  0x53   :  { %248 = vmatprep.subr.bf16.mxu0 %v2664_v11  ;;  %v2683_v26 = vld [vmem:[#allocation5] sm:$0xff]   ;;  %2309 = vmatprep.subr.bf16.mxu1 %v2682_v25  ;;  %v2687_v29 = vld [vmem:[#allocation5 + $0x8] sm:$0xff]   ;;  %v2690_v30 = vld [vmem:[#allocation5 + $0x50] sm:$0xff]  }
  0x54   :  { %112 = vperm.xlu1 %2657, %v91_v8   ;;  %v2684_v27 = vld [vmem:[#allocation5 + $0xc0] sm:$0xff]   ;;  %2310 = vmatpush3.bf16.msra.mxu1 %v2683_v26  ;;  %v2691_v31 = vld [vmem:[#allocation5 + $0x10] sm:$0xff]   ;;  %v2694_v32 = vld [vmem:[#allocation5 + $0x58] sm:$0xff]  }
  0x55   :  { %109 = vperm.xlu0 %2656, %v90_v9   ;;  %2311 = vmatprep.subr.bf16.mxu1 %v2686_v28  ;;  %v2695_v33 = vld [vmem:[#allocation5 + $0x18] sm:$0xff]   ;;  %v2698_v34 = vld [vmem:[#allocation5 + $0x60] sm:$0xff]   ;;  %v2702_v36 = vld [vmem:[#allocation5 + $0x68] sm:$0xff]  }
  0x56   :  { %249 = vmatpush1.bf16.msra.mxu0 %v2666_v14  ;;  %v2699_v35 = vld [vmem:[#allocation5 + $0x20] sm:$0xff]   ;;  %v2703_v37 = vld [vmem:[#allocation5 + $0x28] sm:$0xff]   ;;  %v2706_v38 = vld [vmem:[#allocation5 + $0x70] sm:$0xff]  }
  0x57   :  { %250 = vmatprep.subr.bf16.mxu0 %v2667_v15  ;;  %v2707_v39 = vld [vmem:[#allocation5 + $0x30] sm:$0xff]   ;;  %v2685_v45 = vld [vmem:[#allocation5 + $0x80] sm:$0xff]   ;;  %v2688_v46 = vld [vmem:[#allocation5 + $0xc8] sm:$0xff]  }
  0x58   :  { %118 = vperm.xlu1 %2657, %v93_v12   ;;  %2312 = vmatpush3.bf16.msra.mxu1 %v2687_v29  ;;  %v2689_v48 = vld [vmem:[#allocation5 + $0x88] sm:$0xff]   ;;  %v2692_v49 = vld [vmem:[#allocation5 + $0xd0] sm:$0xff]   ;;  %v2696_v52 = vld [vmem:[#allocation5 + $0xd8] sm:$0xff]  }
  0x59   :  { %115 = vperm.xlu0 %2656, %v92_v13   ;;  %2313 = vmatprep.subr.bf16.mxu1 %v2690_v30  ;;  %v2693_v51 = vld [vmem:[#allocation5 + $0x90] sm:$0xff]   ;;  %v2697_v55 = vld [vmem:[#allocation5 + $0x98] sm:$0xff]   ;;  %v2700_v56 = vld [vmem:[#allocation5 + $0xe0] sm:$0xff]  }
  0x5a   :  { %251 = vmatpush1.bf16.msra.mxu0 %v2669_v16  ;;  %v2701_v57 = vld [vmem:[#allocation5 + $0xa0] sm:$0xff]   ;;  %v2704_v58 = vld [vmem:[#allocation5 + $0xe8] sm:$0xff]   ;;  %v2708_v62 = vld [vmem:[#allocation5 + $0xf0] sm:$0xff]  }
  0x5b   :  { %252 = vmatprep.subr.bf16.mxu0 %v2670_v17  ;;  %v2705_v61 = vld [vmem:[#allocation5 + $0xa8] sm:$0xff]   ;;  %v2709_v63 = vld [vmem:[#allocation5 + $0xb0] sm:$0xff]   ;;  %v2710_v1 = vld [vmem:[#allocation5 + $0x78] sm:$0xff]  }
  0x5c   :  { %2314 = vmatpush3.bf16.msra.mxu1 %v2691_v31  ;;  %v2712_v2 = vld [vmem:[#allocation5 + $0xf8] sm:$0xff]   ;;  %v2715_v11 = vld [vmem:[#allocation5 + $0x100] sm:$0xff]   ;;  %v2716_v12 = vld [vmem:[#allocation5 + $0x148] sm:$0xff]  }
  0x5d   :  { %2315 = vmatprep.subr.bf16.mxu1 %v2694_v32  ;;  %v2711_v3 = vld [vmem:[#allocation5 + $0x38] sm:$0xff]   ;;  %v2717_v14 = vld [vmem:[#allocation5 + $0x108] sm:$0xff]   ;;  %v2718_v16 = vld [vmem:[#allocation5 + $0x150] sm:$0xff]  }
  0x5e   :  { %253 = vmatpush1.bf16.msra.mxu0 %v2672_v18  ;;  %v2713_v4 = vld [vmem:[#allocation5 + $0xb8] sm:$0xff]   ;;  %v2722_v26 = vld [vmem:[#allocation5 + $0x160] sm:$0xff]   ;;  %v2724_v32 = vld [vmem:[#allocation5 + $0x168] sm:$0xff]  }
  0x5f   :  { %254 = vmatprep.subr.bf16.mxu0 %v2673_v19  ;;  %v2723_v31 = vld [vmem:[#allocation5 + $0x120] sm:$0xff]  }
  0x60   :  { %2316 = vmatpush3.bf16.msra.mxu1 %v2695_v33 }
  0x61   :  { %2317 = vmatprep.subr.bf16.mxu1 %v2698_v34  ;;  %v2725_v34 = vld [vmem:[#allocation5 + $0x128] sm:$0xff]  }
  0x62   :  { %255 = vmatpush1.bf16.msra.mxu0 %v2675_v20 }
  0x63   :  { %256 = vmatprep.subr.bf16.mxu0 %v2676_v21  ;;  %v2719_v21 = vld [vmem:[#allocation5 + $0x110] sm:$0xff]  }
  0x64   :  { %2318 = vmatpush3.bf16.msra.mxu1 %v2699_v35 }
  0x65   :  { %2319 = vmatprep.subr.bf16.mxu1 %v2702_v36  ;;  %v2726_v36 = vld [vmem:[#allocation5 + $0x170] sm:$0xff]  }
  0x66   :  { %257 = vmatpush1.bf16.msra.mxu0 %v2678_v22  ;;  %v2720_v22 = vld [vmem:[#allocation5 + $0x158] sm:$0xff]  }
  0x67   :  { %258 = vmatprep.subr.bf16.mxu0 %v2679_v23 }
  0x68   :  { %2320 = vmatpush3.bf16.msra.mxu1 %v2703_v37 }
  0x69   :  { %2321 = vmatprep.subr.bf16.mxu1 %v2706_v38 }
  0x6a   :  { %259 = vmatpush1.bf16.msra.mxu0 %v2681_v24  ;;  %v2721_v24 = vld [vmem:[#allocation5 + $0x118] sm:$0xff]  }
  0x6b   :  { %2349 = vmatprep.subr.bf16.mxu0 %v2684_v27 }
  0x6c   :  { %2322 = vmatpush3.bf16.msra.mxu1 %v2707_v39 }
  0x6d   :  { %2323 = vmatprep.subr.bf16.mxu1 %v2710_v1  ;;  %v3056_v1 = vshrl.u32 %v94_v40, 7 }
  0x6f   :  { %vm918_vm12 = vcmp.lt.s32.totalorder %v3056_v1, 1  ;;  %vm327_vm13 = vcmp.ne.s32.totalorder %v3056_v1, 0  ;;  %vm943_vm14 = vcmp.lt.s32.totalorder %v3056_v1, 7  ;;  %vm328_vm15 = vcmp.ne.s32.totalorder %v3056_v1, 7 }
  0x70   :  { %2324 = vmatpush3.bf16.msra.mxu1 %v2711_v3 }
  0xcb   :  { %v104_v44 = vpop.permute.xlu1 %103 }
  0xcc   :  { %v98_v41 = vpop.permute.xlu0 %97  ;;  %vm122_vm3 = vcmp.eq.s32.totalorder %v95_v42, %v104_v44  ;;  %v2729_v44 = vld [vmem:[#allocation5 + $0x138] sm:$0xff]  }
  0xcd   :  { %vm120_vm1 = vcmp.eq.s32.totalorder %v95_v42, %v98_v41 }
  0xcf   :  { %v107_v50 = vpop.permute.xlu1 %106 }
  0xd0   :  { %v101_v43 = vpop.permute.xlu0 %100  ;;  %vm123_vm4 = vcmp.eq.s32.totalorder %v95_v42, %v107_v50  ;;  %v2735_v50 = vld [vmem:[#allocation7 + $0x50] sm:$0xff]  }
  0xd1   :  { %vm121_vm0 = vcmp.eq.s32.totalorder %v95_v42, %v101_v43  ;;  %vm2204_vm5 = vmpackc.low %vm123_vm4, %vm122_vm3  ;;  %v2728_v43 = vld [vmem:[#allocation5 + $0x178] sm:$0xff]   ;;  %vm2021_vm3 = vcmask 1044484   ;;  %vm2023_vm4 = vcmask 1045509  }
  0xd2   :  { %vm2202_vm2 = vmpackc.low %vm121_vm0, %vm120_vm1  ;;  %vm2015_vm0 = vcmask 1041409   ;;  %vm2017_vm1 = vcmask 1042434  }
  0xd3   :  { %2203 = vmatmul.mubr.msk.bf16.vlgmr.msra.gmra.mrb[0].mxu0 %vm2202_vm2, %v2905_v47  ;;  %v113_v53 = vpop.permute.xlu1 %112  ;;  %vm2019_vm2 = vcmask 1043459  }
  0xd4   :  { %286 = vmatprep.mubr.bf16.mxu0 %v2904_v0  ;;  %2350 = vmatpush3.bf16.msra.mxu0 %v2685_v45  ;;  %v110_v54 = vpop.permute.xlu0 %109  ;;  %vm125_vm6 = vcmp.eq.s32.totalorder %v95_v42, %v113_v53  ;;  %v2730_v45 = vld [vmem:[#allocation7] sm:$0xff]  }
  0xd5   :  { %2351 = vmatprep.subr.bf16.mxu0 %v2688_v46  ;;  %vm124_vm7 = vcmp.eq.s32.totalorder %v95_v42, %v110_v54  ;;  %v2731_v46 = vld [vmem:[#allocation7 + $0x40] sm:$0xff]  }
  0xd6   :  { %vm2206_vm8 = vmpackc.low %vm125_vm6, %vm124_vm7  ;;  %v2738_v53 = vld [vmem:[#allocation7 + $0x20] sm:$0xff]   ;;  %vm2027_vm6 = vcmask 1047559  }
  0xd7   :  { %v119_v59 = vpop.permute.xlu1 %118  ;;  %v2739_v54 = vld [vmem:[#allocation7 + $0x60] sm:$0xff]  }
  0xd8   :  { %2352 = vmatpush3.bf16.msra.mxu0 %v2689_v48  ;;  %v116_v60 = vpop.permute.xlu0 %115  ;;  %vm127_vm9 = vcmp.eq.s32.totalorder %v95_v42, %v119_v59  ;;  %v2733_v48 = vld [vmem:[#allocation7 + $0x48] sm:$0xff]   ;;  %v2744_v59 = vld [vmem:[#allocation7 + $0x38] sm:$0xff]  }
  0xd9   :  { %2353 = vmatprep.subr.bf16.mxu0 %v2692_v49  ;;  %vm126_vm10 = vcmp.eq.s32.totalorder %v95_v42, %v116_v60  ;;  %v2727_v42 = vld [vmem:[#allocation5 + $0x130] sm:$0xff]   ;;  %v2745_v60 = vld [vmem:[#allocation7 + $0x78] sm:$0xff]  }
  0xda   :  { %vm2208_vm11 = vmpackc.low %vm127_vm9, %vm126_vm10  ;;  %v2734_v49 = vld [vmem:[#allocation7 + $0x10] sm:$0xff]  }
  0xdb   :  { %2205 = vmatmul.mubr.msk.bf16.gmra.mrb[4].mxu0 %vm2204_vm5, %v2905_v47  ;;  %vm2025_vm5 = vcmask 1046534  }
  0xdc   :  { %296 = vmatprep.mubr.bf16.mxu0 %v2904_v0  ;;  %2354 = vmatpush3.bf16.msra.mxu0 %v2693_v51  ;;  %v2736_v51 = vld [vmem:[#allocation7 + $0x18] sm:$0xff]  }
  0xdd   :  { %2355 = vmatprep.subr.bf16.mxu0 %v2696_v52  ;;  %v2737_v52 = vld [vmem:[#allocation7 + $0x58] sm:$0xff]  }
  0xe0   :  { %2356 = vmatpush3.bf16.msra.mxu0 %v2697_v55  ;;  %v2740_v55 = vld [vmem:[#allocation7 + $0x28] sm:$0xff]  }
  0xe1   :  { %2357 = vmatprep.subr.bf16.mxu0 %v2700_v56  ;;  %v2741_v56 = vld [vmem:[#allocation7 + $0x68] sm:$0xff]  }
  0xe3   :  { %2207 = vmatmul.mubr.msk.bf16.gmra.mrb[8].mxu0 %vm2206_vm8, %v2905_v47 }
  0xe4   :  { %306 = vmatprep.mubr.bf16.mxu0 %v2904_v0  ;;  %2358 = vmatpush3.bf16.msra.mxu0 %v2701_v57  ;;  %v2714_v0 = vld [vmem:[#allocation5 + $0x140] sm:$0xff]   ;;  %v2742_v57 = vld [vmem:[#allocation7 + $0x30] sm:$0xff]  }
  0xe5   :  { %2359 = vmatprep.subr.bf16.mxu0 %v2704_v58  ;;  %2389 = vmatprep.subr.bf16.mxu1 %v2714_v0  ;;  %v2743_v58 = vld [vmem:[#allocation7 + $0x70] sm:$0xff]  }
  0xe8   :  { %2360 = vmatpush3.bf16.msra.mxu0 %v2705_v61  ;;  %v3052_v61 = vld [vmem:[#allocation7 + $0x80] sm:$0xff]  }
  0xe9   :  { %2361 = vmatprep.subr.bf16.mxu0 %v2708_v62 }
  0xeb   :  { %2209 = vmatmul.mubr.msk.bf16.gmra.mrb[12].mxu0 %vm2208_vm11, %v2905_v47  ;;  %v2732_v47 = vld [vmem:[#allocation7 + $0x8] sm:$0xff]  }
  0xec   :  { %2362 = vmatpush3.bf16.msra.mxu0 %v2709_v63 }
  0xed   :  { %2363 = vmatprep.subr.bf16.mxu0 %v2712_v2 }
  0xf0   :  { %2364 = vmatpush3.bf16.msra.mxu0 %v2713_v4 }
  0xf1   :  { %2501 = vmatprep.subr.bf16.mxu0 %v2730_v45 }
 0x1a6   :  { %v278_v5 = vpop.f32.mrb[0].mxu0 }
 0x1a7   :  { %v280_v6 = vpop.f32.mrb[1].mxu0 }
 0x1a8   :  { %v282_v7 = vpop.f32.mrb[2].mxu0 }
 0x1a9   :  { %v3047_v8 = vpack.c.bf16 %v282_v7, %v278_v5  ;;  %v284_v9 = vpop.f32.mrb[3].mxu0 }
 0x1aa   :  { %v318_v10 = vpack.c.bf16 %v284_v9, %v280_v6 }
 0x1ac   :  { %489 = vmatprep.mubr.bf16.mxu1 %v318_v10  ;;  %683 = vmatprep.mubr.bf16.mxu0 %v318_v10 }
 0x1ad   :  { %490 = vmatmul.mubr.bf16.vlgmr.msra.gmra.mrb[0].mxu1 %v3047_v8  ;;  %684 = vmatmul.mubr.bf16.vlgmr.msra.gmra.mrb[16].mxu0 %v3047_v8 }
 0x1ae   :  { %2390 = vmatpush3.bf16.msra.mxu1 %v2715_v11  ;;  %v288_v13 = vpop.f32.mrb[4].mxu0  ;;  %2502 = vmatpush3.bf16.msra.mxu0 %v2730_v45 }
 0x1af   :  { %v290_v15 = vpop.f32.mrb[5].mxu0  ;;  %2391 = vmatprep.subr.bf16.mxu1 %v2716_v12  ;;  %2503 = vmatprep.subr.bf16.mxu0 %v2732_v47 }
 0x1b0   :  { %v292_v17 = vpop.f32.mrb[6].mxu0 }
 0x1b1   :  { %v319_v18 = vpack.c.bf16 %v292_v17, %v288_v13  ;;  %v294_v19 = vpop.f32.mrb[7].mxu0 }
 0x1b2   :  { %v320_v20 = vpack.c.bf16 %v294_v19, %v290_v15  ;;  %2392 = vmatpush3.bf16.msra.mxu1 %v2717_v14  ;;  %2504 = vmatpush3.bf16.msra.mxu0 %v2732_v47 }
 0x1b3   :  { %2393 = vmatprep.subr.bf16.mxu1 %v2718_v16  ;;  %2505 = vmatprep.subr.bf16.mxu0 %v2734_v49 }
 0x1b4   :  { %497 = vmatprep.mubr.bf16.mxu1 %v320_v20  ;;  %691 = vmatprep.mubr.bf16.mxu0 %v320_v20 }
 0x1b5   :  { %498 = vmatmul.mubr.bf16.gmra.mrb[4].mxu1 %v319_v18  ;;  %692 = vmatmul.mubr.bf16.gmra.mrb[20].mxu0 %v319_v18 }
 0x1b6   :  { %2394 = vmatpush3.bf16.msra.mxu1 %v2719_v21  ;;  %v298_v23 = vpop.f32.mrb[8].mxu0  ;;  %2506 = vmatpush3.bf16.msra.mxu0 %v2734_v49 }
 0x1b7   :  { %v300_v25 = vpop.f32.mrb[9].mxu0  ;;  %2395 = vmatprep.subr.bf16.mxu1 %v2720_v22  ;;  %2507 = vmatprep.subr.bf16.mxu0 %v2736_v51 }
 0x1b8   :  { %v302_v27 = vpop.f32.mrb[10].mxu0 }
 0x1b9   :  { %v321_v28 = vpack.c.bf16 %v302_v27, %v298_v23  ;;  %v304_v29 = vpop.f32.mrb[11].mxu0 }
 0x1ba   :  { %v322_v30 = vpack.c.bf16 %v304_v29, %v300_v25  ;;  %2396 = vmatpush3.bf16.msra.mxu1 %v2721_v24  ;;  %2508 = vmatpush3.bf16.msra.mxu0 %v2736_v51 }
 0x1bb   :  { %2397 = vmatprep.subr.bf16.mxu1 %v2722_v26  ;;  %2509 = vmatprep.subr.bf16.mxu0 %v2738_v53 }
 0x1bc   :  { %505 = vmatprep.mubr.bf16.mxu1 %v322_v30  ;;  %699 = vmatprep.mubr.bf16.mxu0 %v322_v30 }
 0x1bd   :  { %506 = vmatmul.mubr.bf16.gmra.mrb[8].mxu1 %v321_v28  ;;  %700 = vmatmul.mubr.bf16.gmra.mrb[24].mxu0 %v321_v28 }
 0x1be   :  { %2398 = vmatpush3.bf16.msra.mxu1 %v2723_v31  ;;  %v308_v33 = vpop.f32.mrb[12].mxu0  ;;  %2510 = vmatpush3.bf16.msra.mxu0 %v2738_v53 }
 0x1bf   :  { %v310_v35 = vpop.f32.mrb[13].mxu0  ;;  %2399 = vmatprep.subr.bf16.mxu1 %v2724_v32  ;;  %2511 = vmatprep.subr.bf16.mxu0 %v2740_v55 }
 0x1c0   :  { %v312_v37 = vpop.f32.mrb[14].mxu0 }
 0x1c1   :  { %v323_v38 = vpack.c.bf16 %v312_v37, %v308_v33  ;;  %v314_v39 = vpop.f32.mrb[15].mxu0 }
 0x1c2   :  { %v324_v41 = vpack.c.bf16 %v314_v39, %v310_v35  ;;  %2400 = vmatpush3.bf16.msra.mxu1 %v2725_v34  ;;  %2512 = vmatpush3.bf16.msra.mxu0 %v2740_v55 }
 0x1c3   :  { %2401 = vmatprep.subr.bf16.mxu1 %v2726_v36  ;;  %2513 = vmatprep.subr.bf16.mxu0 %v2742_v57 }
 0x1c4   :  { %513 = vmatprep.mubr.bf16.mxu1 %v324_v41  ;;  %707 = vmatprep.mubr.bf16.mxu0 %v324_v41 }
 0x1c5   :  { %514 = vmatmul.mubr.bf16.gmra.mrb[12].mxu1 %v323_v38  ;;  %708 = vmatmul.mubr.bf16.gmra.mrb[28].mxu0 %v323_v38 }
 0x1c6   :  { %2402 = vmatpush3.bf16.msra.mxu1 %v2727_v42  ;;  %877 = vmatprep.mubr.bf16.mxu1 %v318_v10 }
 0x1c7   :  { %2403 = vmatprep.subr.bf16.mxu1 %v2728_v43  ;;  %2514 = vmatpush3.bf16.msra.mxu0 %v2742_v57 }
 0x1c8   :  { %2515 = vmatprep.subr.bf16.mxu0 %v2744_v59 }
 0x1ca   :  { %2404 = vmatpush3.bf16.msra.mxu1 %v2729_v44 }
 0x1cb   :  { %2525 = vmatprep.subr.bf16.mxu1 %v2731_v46  ;;  %2516 = vmatpush3.bf16.msra.mxu0 %v2744_v59 }
 0x1cc   :  { %2549 = vmatprep.subr.bf16.mxu0 %v3052_v61 }
 0x1cd   :  { %878 = vmatmul.mubr.bf16.vlgmr.msra.gmra.mrb[16].mxu1 %v3047_v8 }
 0x1ce   :  { %885 = vmatprep.mubr.bf16.mxu1 %v320_v20  ;;  %2526 = vmatpush3.bf16.msra.mxu1 %v2731_v46 }
 0x1cf   :  { %2527 = vmatprep.subr.bf16.mxu1 %v2733_v48 }
 0x1d2   :  { %2528 = vmatpush3.bf16.msra.mxu1 %v2733_v48 }
 0x1d3   :  { %2529 = vmatprep.subr.bf16.mxu1 %v2735_v50 }
 0x1d5   :  { %886 = vmatmul.mubr.bf16.gmra.mrb[20].mxu1 %v319_v18 }
 0x1d6   :  { %893 = vmatprep.mubr.bf16.mxu1 %v322_v30  ;;  %2530 = vmatpush3.bf16.msra.mxu1 %v2735_v50 }
 0x1d7   :  { %2531 = vmatprep.subr.bf16.mxu1 %v2737_v52 }
 0x1da   :  { %2532 = vmatpush3.bf16.msra.mxu1 %v2737_v52 }
 0x1db   :  { %2533 = vmatprep.subr.bf16.mxu1 %v2739_v54 }
 0x1dd   :  { %894 = vmatmul.mubr.bf16.gmra.mrb[24].mxu1 %v321_v28 }
 0x1de   :  { %901 = vmatprep.mubr.bf16.mxu1 %v324_v41  ;;  %2534 = vmatpush3.bf16.msra.mxu1 %v2739_v54 }
 0x1df   :  { %2535 = vmatprep.subr.bf16.mxu1 %v2741_v56 }
 0x1e2   :  { %2536 = vmatpush3.bf16.msra.mxu1 %v2741_v56 }
 0x1e3   :  { %2537 = vmatprep.subr.bf16.mxu1 %v2743_v58 }
 0x1e5   :  { %902 = vmatmul.mubr.bf16.gmra.mrb[28].mxu1 %v323_v38 }
 0x1e6   :  { %2538 = vmatpush3.bf16.msra.mxu1 %v2743_v58 }
 0x1e7   :  { %2539 = vmatprep.subr.bf16.mxu1 %v2745_v60 }
 0x1ea   :  { %2540 = vmatpush3.bf16.msra.mxu1 %v2745_v60 }
 0x280   :  { %v2325_v62 = vpop.f32.mrb[0].mxu1  ;;  %v2365_v63 = vpop.f32.mrb[16].mxu0 }
 0x281   :  { %v2326_v2 = vpop.f32.mrb[1].mxu1  ;;  %v2366_v3 = vpop.f32.mrb[17].mxu0 }
 0x282   :  { %v3058_v4 = vadd.f32 %v2326_v2, %v2325_v62  ;;  %v3060_v0 = vadd.f32 %v2366_v3, %v2365_v63  ;;  %v2328_v5 = vpop.f32.mrb[2].mxu1  ;;  %v2368_v6 = vpop.f32.mrb[18].mxu0 }
 0x283   :  { %v2329_v7 = vpop.f32.mrb[3].mxu1  ;;  %v2369_v8 = vpop.f32.mrb[19].mxu0 }
 0x284   :  { %v2330_v9 = vadd.f32 %v2329_v7, %v2328_v5  ;;  %v2370_v10 = vadd.f32 %v2369_v8, %v2368_v6  ;;  %v910_v11 = vrot.slane %v3058_v4, 7 }
 0x286   :  { %v911_v40 = vrot.slane %v2330_v9, 7 }
 0x288   :  { %v925_v12 = vsel %vm918_vm12, %v910_v11, %v911_v40  ;;  %v2331_v13 = vpop.f32.mrb[4].mxu1  ;;  %v2371_v14 = vpop.f32.mrb[20].mxu0 }
 0x289   :  { %v928_v15 = vsel %vm327_vm13, %v925_v12, 0.0  ;;  %v2332_v16 = vpop.f32.mrb[5].mxu1  ;;  %v2372_v17 = vpop.f32.mrb[21].mxu0 }
 0x28a   :  { %v3071_v18 = vadd.f32 %v2370_v10, %v928_v15  ;;  %v2333_v19 = vadd.f32 %v2332_v16, %v2331_v13  ;;  %v2373_v20 = vadd.f32 %v2372_v17, %v2371_v14  ;;  %v2334_v21 = vpop.f32.mrb[6].mxu1  ;;  %v2374_v22 = vpop.f32.mrb[22].mxu0 }
 0x28b   :  { %v2335_v23 = vpop.f32.mrb[7].mxu1  ;;  %v2375_v24 = vpop.f32.mrb[23].mxu0 }
 0x28c   :  { %v912_v25 = vrot.slane %v2333_v19, 7  ;;  %v2336_v26 = vadd.f32 %v2335_v23, %v2334_v21  ;;  %v2376_v27 = vadd.f32 %v2375_v24, %v2374_v22 }
 0x28e   :  { %v924_v28 = vsel %vm918_vm12, %v911_v40, %v912_v25  ;;  %v913_v29 = vrot.slane %v2336_v26, 7 }
 0x28f   :  { %v929_v30 = vsel %vm327_vm13, %v924_v28, 0.0 }
 0x290   :  { %v3077_v31 = vadd.f32 %v2373_v20, %v929_v30  ;;  %v923_v32 = vsel %vm918_vm12, %v912_v25, %v913_v29  ;;  %v2337_v33 = vpop.f32.mrb[8].mxu1  ;;  %v2377_v34 = vpop.f32.mrb[24].mxu0 }
 0x291   :  { %v930_v35 = vsel %vm327_vm13, %v923_v32, 0.0  ;;  %v2338_v36 = vpop.f32.mrb[9].mxu1  ;;  %v2378_v37 = vpop.f32.mrb[25].mxu0 }
 0x292   :  { %v3083_v38 = vadd.f32 %v2376_v27, %v930_v35  ;;  %v2339_v39 = vadd.f32 %v2338_v36, %v2337_v33  ;;  %v2379_v41 = vadd.f32 %v2378_v37, %v2377_v34  ;;  %v2340_v42 = vpop.f32.mrb[10].mxu1  ;;  %v2380_v43 = vpop.f32.mrb[26].mxu0 }
 0x293   :  { %v2341_v44 = vpop.f32.mrb[11].mxu1  ;;  %v2381_v45 = vpop.f32.mrb[27].mxu0 }
 0x294   :  { %v914_v46 = vrot.slane %v2339_v39, 7  ;;  %v2342_v47 = vadd.f32 %v2341_v44, %v2340_v42  ;;  %v2382_v48 = vadd.f32 %v2381_v45, %v2380_v43 }
 0x296   :  { %v922_v49 = vsel %vm918_vm12, %v913_v29, %v914_v46  ;;  %v915_v50 = vrot.slane %v2342_v47, 7  ;;  %v3130_v29 = vld [vmem:[%s3396_s3] ss:$0 sm:$0xff] }
 0x297   :  { %v931_v51 = vsel %vm327_vm13, %v922_v49, 0.0 }
 0x298   :  { %v3089_v52 = vadd.f32 %v2379_v41, %v931_v51  ;;  %v921_v53 = vsel %vm918_vm12, %v914_v46, %v915_v50  ;;  %v2343_v54 = vpop.f32.mrb[12].mxu1  ;;  %v2383_v55 = vpop.f32.mrb[28].mxu0 }
 0x299   :  { %v932_v56 = vsel %vm327_vm13, %v921_v53, 0.0  ;;  %v2344_v57 = vpop.f32.mrb[13].mxu1  ;;  %v2384_v58 = vpop.f32.mrb[29].mxu0 }
 0x29a   :  { %v3095_v59 = vadd.f32 %v2382_v48, %v932_v56  ;;  %v2345_v60 = vadd.f32 %v2344_v57, %v2343_v54  ;;  %v2385_v62 = vadd.f32 %v2384_v58, %v2383_v55  ;;  %v2346_v63 = vpop.f32.mrb[14].mxu1  ;;  %v2386_v2 = vpop.f32.mrb[30].mxu0 }
 0x29b   :  { %v2347_v3 = vpop.f32.mrb[15].mxu1  ;;  %v2387_v5 = vpop.f32.mrb[31].mxu0 }
 0x29c   :  { %v916_v6 = vrot.slane %v2345_v60, 7  ;;  %v2348_v7 = vadd.f32 %v2347_v3, %v2346_v63  ;;  %v2388_v8 = vadd.f32 %v2387_v5, %v2386_v2 }
 0x29e   :  { %v920_v9 = vsel %vm918_vm12, %v915_v50, %v916_v6  ;;  %v917_v10 = vrot.slane %v2348_v7, 7 }
 0x29f   :  { %v933_v40 = vsel %vm327_vm13, %v920_v9, 0.0 }
 0x2a0   :  { %v3101_v12 = vadd.f32 %v2385_v62, %v933_v40  ;;  %v926_v13 = vsel %vm918_vm12, %v917_v10, %v910_v11  ;;  %v919_v14 = vsel %vm918_vm12, %v916_v6, %v917_v10  ;;  %v2405_v15 = vpop.f32.mrb[16].mxu1 }
 0x2a1   :  { %v927_v16 = vsel %vm327_vm13, %v926_v13, 0.0  ;;  %v934_v17 = vsel %vm327_vm13, %v919_v14, 0.0  ;;  %v2406_v19 = vpop.f32.mrb[17].mxu1 }
 0x2a2   :  { %v960_v20 = vadd.f32 %v3060_v0, %v927_v16  ;;  %v3114_v21 = vadd.f32 %v2388_v8, %v934_v17  ;;  %v3116_v22 = vadd.f32 %v2406_v19, %v2405_v15  ;;  %v2408_v4 = vpop.f32.mrb[18].mxu1 }
 0x2a3   :  { %v2409_v23 = vpop.f32.mrb[19].mxu1 }
 0x2a4   :  { %v2410_v11 = vadd.f32 %v2409_v23, %v2408_v4  ;;  %v935_v24 = vrot.slane %v3116_v22, 1 }
 0x2a6   :  { %v936_v25 = vrot.slane %v2410_v11, 1 }
 0x2a8   :  { %v950_v26 = vsel %vm943_vm14, %v935_v24, %v936_v25  ;;  %v2411_v0 = vpop.f32.mrb[20].mxu1 }
 0x2a9   :  { %v952_v27 = vsel %vm328_vm15, %v950_v26, 0.0  ;;  %v2412_v28 = vpop.f32.mrb[21].mxu1 }
 0x2aa   :  { %v968_v30 = vadd.f32 %v960_v20, %v952_v27  ;;  %v2413_v32 = vadd.f32 %v2412_v28, %v2411_v0  ;;  %v2414_v33 = vpop.f32.mrb[22].mxu1 }
 0x2ab   :  { %v2415_v34 = vpop.f32.mrb[23].mxu1 }
 0x2ac   :  { %v937_v35 = vrot.slane %v2413_v32, 1  ;;  %v2416_v36 = vadd.f32 %v2415_v34, %v2414_v33  ;;  %v983_v37 = vadd.f32 %v3130_v29, %v968_v30 }
 0x2ae   :  { %v949_v39 = vsel %vm943_vm14, %v936_v25, %v937_v35  ;;  %v938_v41 = vrot.slane %v2416_v36, 1  ;;  %v991_v42 = vmax.f32 %v983_v37, 0.0 }
 0x2af   :  { %v953_v43 = vsel %vm328_vm15, %v949_v39, 0.0 }
 0x2b0   :  { %v969_v44 = vadd.f32 %v3071_v18, %v953_v43  ;;  %v948_v45 = vsel %vm943_vm14, %v937_v35, %v938_v41  ;;  %v2417_v46 = vpop.f32.mrb[24].mxu1  ;;  %v1959_v47 = vrot.slane %v991_v42, 4 }
 0x2b1   :  { %v954_v48 = vsel %vm328_vm15, %v948_v45, 0.0  ;;  %v2418_v49 = vpop.f32.mrb[25].mxu1 }
 0x2b2   :  { %v970_v50 = vadd.f32 %v3077_v31, %v954_v48  ;;  %v2419_v51 = vadd.f32 %v2418_v49, %v2417_v46  ;;  %v2420_v53 = vpop.f32.mrb[26].mxu1  ;;  %v984_v54 = vadd.f32 %v3130_v29, %v969_v44  ;;  %v1960_v55 = vmax.f32 %v991_v42, %v1959_v47 }
 0x2b3   :  { %v2421_v56 = vpop.f32.mrb[27].mxu1 }
 0x2b4   :  { %v985_v57 = vadd.f32 %v3130_v29, %v970_v50  ;;  %v939_v18 = vrot.slane %v2419_v51, 1  ;;  %v2422_v58 = vadd.f32 %v2421_v56, %v2420_v53  ;;  %v992_v60 = vmax.f32 %v984_v54, 0.0 }
 0x2b5   :  { %v1961_v62 = vrot.slane %v1960_v55, 2 }
 0x2b6   :  { %v993_v63 = vmax.f32 %v985_v57, 0.0  ;;  %v947_v2 = vsel %vm943_vm14, %v938_v41, %v939_v18  ;;  %v940_v3 = vrot.slane %v2422_v58, 1  ;;  %v3147_v5 = vpack.c.bf16 %v992_v60, %v991_v42  ;;  %v2747_v41 = vld [vmem:[#allocation7 + $0x88] sm:$0xff]  }
 0x2b7   :  { %v955_v31 = vsel %vm328_vm15, %v947_v2, 0.0  ;;  %v1962_v6 = vmax.f32 %v1960_v55, %v1961_v62  ;;  %v1965_v7 = vrot.slane %v992_v60, 4 }
 0x2b8   :  { %v1971_v8 = vrot.slane %v993_v63, 4  ;;  %v971_v9 = vadd.f32 %v3083_v38, %v955_v31  ;;  %v946_v10 = vsel %vm943_vm14, %v939_v18, %v940_v3  ;;  %v2423_v40 = vpop.f32.mrb[28].mxu1  ;;  %2517 = vmatprep.mubr.bf16.mxu0 %v3147_v5  ;;  %2541 = vmatprep.mubr.bf16.mxu1 %v3147_v5 }
 0x2b9   :  { %v956_v13 = vsel %vm328_vm15, %v946_v10, 0.0  ;;  %v1963_v14 = vrot.slane %v1962_v6, 1  ;;  %v1966_v15 = vmax.f32 %v992_v60, %v1965_v7  ;;  %v2424_v16 = vpop.f32.mrb[29].mxu1 }
 0x2ba   :  { %v1972_v17 = vmax.f32 %v993_v63, %v1971_v8  ;;  %v986_v19 = vadd.f32 %v3130_v29, %v971_v9  ;;  %v972_v20 = vadd.f32 %v3089_v52, %v956_v13  ;;  %v2425_v38 = vadd.f32 %v2424_v16, %v2423_v40  ;;  %v2426_v4 = vpop.f32.mrb[30].mxu1  ;;  %v2749_v9 = vld [vmem:[#allocation7 + $0x98] sm:$0xff]  }
 0x2bb   :  { %v1967_v23 = vrot.slane %v1966_v15, 2  ;;  %v2427_v11 = vpop.f32.mrb[31].mxu1  ;;  %v1964_v28 = vmax.f32 %v1962_v6, %v1963_v14 }
 0x2bc   :  { %v1973_v25 = vrot.slane %v1972_v17, 2  ;;  %v994_v26 = vmax.f32 %v986_v19, 0.0  ;;  %v941_v0 = vrot.slane %v2425_v38, 1  ;;  %v2428_v27 = vadd.f32 %v2427_v11, %v2426_v4 }
 0x2bd   :  { %v1968_v30 = vmax.f32 %v1966_v15, %v1967_v23  ;;  %v987_v32 = vadd.f32 %v3130_v29, %v972_v20  ;;  %v2750_v20 = vld [vmem:[#allocation7 + $0xa0] sm:$0xff]  }
 0x2be   :  { %v1974_v33 = vmax.f32 %v1972_v17, %v1973_v25  ;;  %v1977_v34 = vrot.slane %v994_v26, 4  ;;  %v945_v35 = vsel %vm943_vm14, %v940_v3, %v941_v0  ;;  %v942_v52 = vrot.slane %v2428_v27, 1 }
 0x2bf   :  { %v1969_v36 = vrot.slane %v1968_v30, 1  ;;  %v957_v37 = vsel %vm328_vm15, %v945_v35, 0.0  ;;  %v3165_v39 = vpack.c.bf16 %v994_v26, %v993_v63  ;;  %v995_v42 = vmax.f32 %v987_v32, 0.0 }
 0x2c0   :  { %v1975_v43 = vrot.slane %v1974_v33, 1  ;;  %v1978_v44 = vmax.f32 %v994_v26, %v1977_v34  ;;  %v973_v45 = vadd.f32 %v3095_v59, %v957_v37  ;;  %v944_v46 = vsel %vm943_vm14, %v941_v0, %v942_v52  ;;  %v2751_v0 = vld [vmem:[#allocation7 + $0xa8] sm:$0xff]   ;;  %v2753_v37 = vld [vmem:[#allocation7 + $0xb8] sm:$0xff]  }
 0x2c1   :  { %v1970_v47 = vmax.f32 %v1968_v30, %v1969_v36  ;;  %v951_v48 = vsel %vm943_vm14, %v942_v52, %v935_v24  ;;  %v958_v49 = vsel %vm328_vm15, %v944_v46, 0.0  ;;  %2518 = vmatmul.mubr.bf16.vlgmr.msra.gmra.mrb[32].mxu0 %v3165_v39  ;;  %2542 = vmatmul.mubr.bf16.vlgmr.msra.gmra.mrb[32].mxu1 %v3165_v39  ;;  %v1983_v50 = vrot.slane %v995_v42, 4  ;;  %v2748_v24 = vld [vmem:[#allocation7 + $0x90] sm:$0xff]  }
 0x2c2   :  { %v1976_v51 = vmax.f32 %v1974_v33, %v1975_v43  ;;  %v1979_v53 = vrot.slane %v1978_v44, 2  ;;  %v959_v59 = vsel %vm328_vm15, %v951_v48, 0.0  ;;  %v974_v54 = vadd.f32 %v3101_v12, %v958_v49  ;;  %2550 = vmatpush3.bf16.msra.mxu0 %v3052_v61  ;;  %v2756_v43 = vld [vmem:[#allocation8 + $0x8] sm:$0xff]   ;;  %v2759_v46 = vld [vmem:[#allocation8 + $0x50] sm:$0xff]   ;;  %v2762_v48 = vld [vmem:[#allocation8 + $0x20] sm:$0xff]  }
 0x2c3   :  { %v975_v22 = vadd.f32 %v3114_v21, %v959_v59  ;;  %2551 = vmatprep.subr.bf16.mxu0 %v2747_v41  ;;  %v988_v55 = vadd.f32 %v3130_v29, %v973_v45  ;;  %v1984_v56 = vmax.f32 %v995_v42, %v1983_v50  ;;  %v2016_v57 = vsel %vm2015_vm0, %v1970_v47, %v1964_v28  ;;  %v2758_v45 = vld [vmem:[#allocation8 + $0x10] sm:$0xff]   ;;  %v2761_v47 = vld [vmem:[#allocation8 + $0x58] sm:$0xff]   ;;  %v2763_v49 = vld [vmem:[#allocation8 + $0x60] sm:$0xff]  }
 0x2c4   :  { %v1980_v18 = vmax.f32 %v1978_v44, %v1979_v53  ;;  %v989_v58 = vadd.f32 %v3130_v29, %v974_v54  ;;  %v2018_v60 = vsel %vm2017_vm1, %v1976_v51, %v2016_v57  ;;  %v2757_v44 = vld [vmem:[#allocation8 + $0x48] sm:$0xff]   ;;  %v2766_v53 = vld [vmem:[#allocation8 + $0x30] sm:$0xff]   ;;  %v2768_v54 = vld [vmem:[#allocation8 + $0x38] sm:$0xff]  }
 0x2c5   :  { %v996_v62 = vmax.f32 %v988_v55, 0.0  ;;  %v1985_v63 = vrot.slane %v1984_v56, 2  ;;  %v990_v12 = vadd.f32 %v3130_v29, %v975_v22  ;;  %v2764_v50 = vld [vmem:[#allocation8 + $0x28] sm:$0xff]   ;;  %v2767_v59 = vld [vmem:[#allocation8 + $0x70] sm:$0xff]   ;;  %v2769_v22 = vld [vmem:[#allocation8 + $0x78] sm:$0xff]  }
 0x2c6   :  { %v1981_v2 = vrot.slane %v1980_v18, 1  ;;  %2552 = vmatpush3.bf16.msra.mxu0 %v2747_v41  ;;  %v997_v61 = vmax.f32 %v989_v58, 0.0  ;;  %v2754_v41 = vld [vmem:[#allocation8] sm:$0xff]   ;;  %v2765_v51 = vld [vmem:[#allocation8 + $0x68] sm:$0xff]  }
 0x2c7   :  { %2553 = vmatprep.subr.bf16.mxu0 %v2748_v24  ;;  %v1001_v21 = vpack.c.bf16 %v996_v62, %v995_v42  ;;  %v1986_v3 = vmax.f32 %v1984_v56, %v1985_v63  ;;  %v1989_v31 = vrot.slane %v996_v62, 4  ;;  %v998_v6 = vmax.f32 %v990_v12, 0.0  ;;  %v2755_v42 = vld [vmem:[#allocation8 + $0x40] sm:$0xff]   ;;  %2573 = vmatprep.subr.bf16.mxu1 %v2754_v41 }
 0x2c8   :  { %v1982_v7 = vmax.f32 %v1980_v18, %v1981_v2  ;;  %v1995_v8 = vrot.slane %v997_v61, 4  ;;  %2574 = vmatpush3.bf16.msra.mxu1 %v2754_v41 }
 0x2c9   :  { %2521 = vmatprep.mubr.bf16.mxu0 %v1001_v21  ;;  %v1987_v10 = vrot.slane %v1986_v3, 1  ;;  %v1990_v40 = vmax.f32 %v996_v62, %v1989_v31  ;;  %2545 = vmatprep.mubr.bf16.mxu1 %v1001_v21  ;;  %v1002_v13 = vpack.c.bf16 %v998_v6, %v997_v61  ;;  %v2001_v14 = vrot.slane %v998_v6, 4 }
 0x2ca   :  { %2554 = vmatpush3.bf16.msra.mxu0 %v2748_v24  ;;  %v1996_v29 = vmax.f32 %v997_v61, %v1995_v8  ;;  %v2020_v15 = vsel %vm2019_vm2, %v1982_v7, %v2018_v60  ;;  %2575 = vmatprep.subr.bf16.mxu1 %v2756_v43  ;;  %v3195_v24 = vld [vmem:[#allocation8 + $0x80] sm:$0xff]  }
 0x2cb   :  { %v1988_v16 = vmax.f32 %v1986_v3, %v1987_v10  ;;  %v1991_v17 = vrot.slane %v1990_v40, 2  ;;  %2522 = vmatmul.mubr.bf16.gmra.mrb[36].mxu0 %v1002_v13  ;;  %v2002_v19 = vmax.f32 %v998_v6, %v2001_v14  ;;  %2546 = vmatmul.mubr.bf16.gmra.mrb[36].mxu1 %v1002_v13 }
 0x2cc   :  { %v1997_v38 = vrot.slane %v1996_v29, 2  ;;  %2555 = vmatprep.subr.bf16.mxu0 %v2749_v9  ;;  %2565 = vmatprep.mubr.bf16.mxu0 %v3147_v5  ;;  %v2752_v5 = vld [vmem:[#allocation7 + $0xb0] sm:$0xff]  }
 0x2cd   :  { %v1992_v4 = vmax.f32 %v1990_v40, %v1991_v17  ;;  %v2003_v23 = vrot.slane %v2002_v19, 2  ;;  %v2022_v11 = vsel %vm2021_vm3, %v1988_v16, %v2020_v15  ;;  %2576 = vmatpush3.bf16.msra.mxu1 %v2756_v43 }
 0x2ce   :  { %v1998_v25 = vmax.f32 %v1996_v29, %v1997_v38  ;;  %2556 = vmatpush3.bf16.msra.mxu0 %v2749_v9  ;;  %2577 = vmatprep.subr.bf16.mxu1 %v2758_v45 }
 0x2cf   :  { %v1993_v26 = vrot.slane %v1992_v4, 1  ;;  %2557 = vmatprep.subr.bf16.mxu0 %v2750_v20  ;;  %v2004_v27 = vmax.f32 %v2002_v19, %v2003_v23 }
 0x2d0   :  { %v1999_v28 = vrot.slane %v1998_v25, 1 }
 0x2d1   :  { %v1994_v30 = vmax.f32 %v1992_v4, %v1993_v26  ;;  %v2005_v32 = vrot.slane %v2004_v27, 1  ;;  %2578 = vmatpush3.bf16.msra.mxu1 %v2758_v45 }
 0x2d2   :  { %2558 = vmatpush3.bf16.msra.mxu0 %v2750_v20  ;;  %v2000_v33 = vmax.f32 %v1998_v25, %v1999_v28 }
 0x2d3   :  { %2559 = vmatprep.subr.bf16.mxu0 %v2751_v0  ;;  %v2006_v34 = vmax.f32 %v2004_v27, %v2005_v32  ;;  %v2024_v35 = vsel %vm2023_vm4, %v1994_v30, %v2022_v11 }
 0x2d4   :  { %v2026_v52 = vsel %vm2025_vm5, %v2000_v33, %v2024_v35 }
 0x2d5   :  { %v2028_v36 = vsel %vm2027_vm6, %v2006_v34, %v2026_v52 }
 0x2d6   :  { %2560 = vmatpush3.bf16.msra.mxu0 %v2751_v0  ;;  %2030 = vst [vmem:[#allocation10] sm:$0xff] %v2028_v36 }
 0x2d7   :  { %2561 = vmatprep.subr.bf16.mxu0 %v2752_v5 }
 0x2da   :  { %2562 = vmatpush3.bf16.msra.mxu0 %v2752_v5 }
 0x2db   :  { %2563 = vmatprep.subr.bf16.mxu0 %v2753_v37 }
 0x2de   :  { %2564 = vmatpush3.bf16.msra.mxu0 %v2753_v37 }
 0x2df   :  { %2597 = vmatprep.subr.bf16.mxu0 %v2755_v42 }
 0x2e1   :  { %2566 = vmatmul.mubr.bf16.vlgmr.msra.gmra.mrb[40].mxu0 %v3165_v39  ;;  %v2760_v39 = vld [vmem:[#allocation8 + $0x18] sm:$0xff]  }
 0x2e2   :  { %2569 = vmatprep.mubr.bf16.mxu0 %v1001_v21  ;;  %2598 = vmatpush3.bf16.msra.mxu0 %v2755_v42 }
 0x2e3   :  { %2599 = vmatprep.subr.bf16.mxu0 %v2757_v44  ;;  %2579 = vmatprep.subr.bf16.mxu1 %v2760_v39 }
 0x2e4   :  { %2580 = vmatpush3.bf16.msra.mxu1 %v2760_v39 }
 0x2e5   :  { %2581 = vmatprep.subr.bf16.mxu1 %v2762_v48 }
 0x2e6   :  { %2600 = vmatpush3.bf16.msra.mxu0 %v2757_v44 }
 0x2e7   :  { %2601 = vmatprep.subr.bf16.mxu0 %v2759_v46 }
 0x2e8   :  { %2582 = vmatpush3.bf16.msra.mxu1 %v2762_v48 }
 0x2e9   :  { %2570 = vmatmul.mubr.bf16.gmra.mrb[44].mxu0 %v1002_v13  ;;  %2583 = vmatprep.subr.bf16.mxu1 %v2764_v50 }
 0x2ea   :  { %2602 = vmatpush3.bf16.msra.mxu0 %v2759_v46 }
 0x2eb   :  { %2603 = vmatprep.subr.bf16.mxu0 %v2761_v47 }
 0x2ec   :  { %2584 = vmatpush3.bf16.msra.mxu1 %v2764_v50 }
 0x2ed   :  { %2585 = vmatprep.subr.bf16.mxu1 %v2766_v53 }
 0x2ee   :  { %2604 = vmatpush3.bf16.msra.mxu0 %v2761_v47 }
 0x2ef   :  { %2605 = vmatprep.subr.bf16.mxu0 %v2763_v49 }
 0x2f0   :  { %2586 = vmatpush3.bf16.msra.mxu1 %v2766_v53  ;;  %v2283_v53 = vld [vmem:[%s3398_s5] ss:$0 sm:$0xff] }
 0x2f1   :  { %2587 = vmatprep.subr.bf16.mxu1 %v2768_v54 }
 0x2f2   :  { %2606 = vmatpush3.bf16.msra.mxu0 %v2763_v49 }
 0x2f3   :  { %2607 = vmatprep.subr.bf16.mxu0 %v2765_v51 }
 0x2f4   :  { %2588 = vmatpush3.bf16.msra.mxu1 %v2768_v54 }
 0x2f5   :  { %2621 = vmatprep.subr.bf16.mxu1 %v3195_v24 }
 0x2f6   :  { %2608 = vmatpush3.bf16.msra.mxu0 %v2765_v51 }
 0x2f7   :  { %2609 = vmatprep.subr.bf16.mxu0 %v2767_v59 }
 0x2fa   :  { %2610 = vmatpush3.bf16.msra.mxu0 %v2767_v59 }
 0x2fb   :  { %2611 = vmatprep.subr.bf16.mxu0 %v2769_v22 }
 0x2fe   :  { %2612 = vmatpush3.bf16.msra.mxu0 %v2769_v22 }
 0x394   :  { %v2519_v55 = vpop.f32.mrb[32].mxu0  ;;  %v2543_v56 = vpop.f32.mrb[32].mxu1 }
 0x395   :  { %v1101_v57 = vpop.f32.mrb[33].mxu0  ;;  %v1231_v18 = vpop.f32.mrb[33].mxu1  ;;  %v1394_v62 = vrot.slane %v2519_v55, 7 }
 0x396   :  { %v2520_v58 = vpop.f32.mrb[34].mxu0  ;;  %v2544_v60 = vpop.f32.mrb[34].mxu1  ;;  %v1392_v61 = vrot.slane %v1101_v57, 7 }
 0x397   :  { %v1395_v63 = vrot.slane %v2520_v58, 7  ;;  %v1104_v12 = vpop.f32.mrb[35].mxu0  ;;  %v1234_v2 = vpop.f32.mrb[35].mxu1 }
 0x398   :  { %v1393_v21 = vrot.slane %v1104_v12, 7 }
 0x399   :  { %v1404_v3 = vsel %vm918_vm12, %v1394_v62, %v1395_v63 }
 0x39a   :  { %v1411_v31 = vsel %vm327_vm13, %v1404_v3, 0.0  ;;  %v1405_v6 = vsel %vm918_vm12, %v1393_v21, %v1394_v62  ;;  %v1406_v7 = vsel %vm918_vm12, %v1392_v61, %v1393_v21 }
 0x39b   :  { %v3206_v8 = vadd.f32 %v2544_v60, %v1411_v31  ;;  %v1410_v9 = vsel %vm327_vm13, %v1405_v6, 0.0  ;;  %v1409_v10 = vsel %vm327_vm13, %v1406_v7, 0.0 }
 0x39c   :  { %v1442_v40 = vadd.f32 %v2543_v56, %v1410_v9  ;;  %v1441_v13 = vadd.f32 %v1409_v10, %v1234_v2 }
 0x39e   :  { %v2523_v14 = vpop.f32.mrb[36].mxu0  ;;  %v2547_v29 = vpop.f32.mrb[36].mxu1 }
 0x39f   :  { %v1117_v15 = vpop.f32.mrb[37].mxu0  ;;  %v1247_v16 = vpop.f32.mrb[37].mxu1  ;;  %v1398_v38 = vrot.slane %v2523_v14, 7 }
 0x3a0   :  { %v1396_v17 = vrot.slane %v1117_v15, 7  ;;  %v2524_v19 = vpop.f32.mrb[38].mxu0  ;;  %v2548_v20 = vpop.f32.mrb[38].mxu1 }
 0x3a1   :  { %v1399_v4 = vrot.slane %v2524_v19, 7  ;;  %v1120_v23 = vpop.f32.mrb[39].mxu0  ;;  %v1250_v11 = vpop.f32.mrb[39].mxu1 }
 0x3a2   :  { %v1403_v25 = vsel %vm918_vm12, %v1395_v63, %v1396_v17  ;;  %v1397_v26 = vrot.slane %v1120_v23, 7 }
 0x3a3   :  { %v1412_v0 = vsel %vm327_vm13, %v1403_v25, 0.0  ;;  %v1407_v27 = vsel %vm918_vm12, %v1399_v4, %v1392_v61  ;;  %v1400_v28 = vsel %vm918_vm12, %v1398_v38, %v1399_v4 }
 0x3a4   :  { %v1444_v30 = vadd.f32 %v1412_v0, %v1247_v16  ;;  %v1408_v32 = vsel %vm327_vm13, %v1407_v27, 0.0  ;;  %v1415_v33 = vsel %vm327_vm13, %v1400_v28, 0.0  ;;  %v1401_v5 = vsel %vm918_vm12, %v1397_v26, %v1398_v38 }
 0x3a5   :  { %v1440_v34 = vadd.f32 %v1408_v32, %v1231_v18  ;;  %v1447_v35 = vadd.f32 %v2548_v20, %v1415_v33  ;;  %v1414_v52 = vsel %vm327_vm13, %v1401_v5, 0.0  ;;  %v1402_v36 = vsel %vm918_vm12, %v1396_v17, %v1397_v26 }
 0x3a6   :  { %v1446_v37 = vadd.f32 %v2547_v29, %v1414_v52  ;;  %v1413_v41 = vsel %vm327_vm13, %v1402_v36, 0.0 }
 0x3a7   :  { %v1445_v42 = vadd.f32 %v1413_v41, %v1250_v11 }
 0x3b4   :  { %v2567_v43 = vpop.f32.mrb[40].mxu0 }
 0x3b5   :  { %v1361_v44 = vpop.f32.mrb[41].mxu0  ;;  %v1418_v46 = vrot.slane %v2567_v43, 1 }
 0x3b6   :  { %v2568_v45 = vpop.f32.mrb[42].mxu0  ;;  %v1416_v48 = vrot.slane %v1361_v44, 1 }
 0x3b7   :  { %v1419_v39 = vrot.slane %v2568_v45, 1  ;;  %v1364_v47 = vpop.f32.mrb[43].mxu0 }
 0x3b8   :  { %v1417_v49 = vrot.slane %v1364_v47, 1 }
 0x3b9   :  { %v1428_v50 = vsel %vm943_vm14, %v1418_v46, %v1419_v39 }
 0x3ba   :  { %v1434_v51 = vsel %vm328_vm15, %v1428_v50, 0.0  ;;  %v1429_v59 = vsel %vm943_vm14, %v1417_v49, %v1418_v46  ;;  %v1430_v54 = vsel %vm943_vm14, %v1416_v48, %v1417_v49 }
 0x3bb   :  { %v1450_v22 = vadd.f32 %v1442_v40, %v1434_v51  ;;  %v1432_v55 = vsel %vm328_vm15, %v1430_v54, 0.0  ;;  %v1433_v56 = vsel %vm328_vm15, %v1429_v59, 0.0 }
 0x3bc   :  { %v1448_v57 = vadd.f32 %v1440_v34, %v1432_v55  ;;  %v1449_v18 = vadd.f32 %v1441_v13, %v1433_v56  ;;  %v2571_v58 = vpop.f32.mrb[44].mxu0 }
 0x3bd   :  { %v1465_v60 = vadd.f32 %v2283_v53, %v1450_v22  ;;  %v1377_v62 = vpop.f32.mrb[45].mxu0  ;;  %v1422_v3 = vrot.slane %v2571_v58, 1  ;;  %v2772_v58 = vld [vmem:[#allocation8 + $0x90] sm:$0xff]  }
 0x3be   :  { %v1420_v63 = vrot.slane %v1377_v62, 1  ;;  %v2572_v12 = vpop.f32.mrb[46].mxu0  ;;  %v1463_v2 = vadd.f32 %v2283_v53, %v1448_v57  ;;  %v1464_v61 = vadd.f32 %v2283_v53, %v1449_v18 }
 0x3bf   :  { %v1473_v21 = vmax.f32 %v1465_v60, 0.0  ;;  %v1423_v31 = vrot.slane %v2572_v12, 1  ;;  %v1380_v6 = vpop.f32.mrb[47].mxu0 }
 0x3c0   :  { %v1427_v7 = vsel %vm943_vm14, %v1419_v39, %v1420_v63  ;;  %v1421_v9 = vrot.slane %v1380_v6, 1  ;;  %v1471_v10 = vmax.f32 %v1463_v2, 0.0  ;;  %v1472_v40 = vmax.f32 %v1464_v61, 0.0  ;;  %v2771_v39 = vld [vmem:[#allocation8 + $0x88] sm:$0xff]  }
 0x3c1   :  { %v2043_v14 = vrot.slane %v1473_v21, 4  ;;  %v1435_v13 = vsel %vm328_vm15, %v1427_v7, 0.0  ;;  %v1424_v29 = vsel %vm943_vm14, %v1422_v3, %v1423_v31  ;;  %v1431_v15 = vsel %vm943_vm14, %v1423_v31, %v1416_v48 }
 0x3c2   :  { %v1451_v16 = vadd.f32 %v3206_v8, %v1435_v13  ;;  %v1438_v17 = vsel %vm328_vm15, %v1424_v29, 0.0  ;;  %v1439_v19 = vsel %vm328_vm15, %v1431_v15, 0.0  ;;  %v1425_v20 = vsel %vm943_vm14, %v1421_v9, %v1422_v3 }
 0x3c3   :  { %v2044_v38 = vmax.f32 %v1473_v21, %v2043_v14  ;;  %v1454_v4 = vadd.f32 %v1446_v37, %v1438_v17  ;;  %v1455_v23 = vadd.f32 %v1447_v35, %v1439_v19  ;;  %v1426_v11 = vsel %vm943_vm14, %v1420_v63, %v1421_v9  ;;  %v2773_v14 = vld [vmem:[#allocation8 + $0x98] sm:$0xff]  }
 0x3c4   :  { %v1466_v25 = vadd.f32 %v2283_v53, %v1451_v16  ;;  %v1436_v26 = vsel %vm328_vm15, %v1426_v11, 0.0  ;;  %v1437_v8 = vsel %vm328_vm15, %v1425_v20, 0.0  ;;  %v3268_v0 = vpack.c.bf16 %v1472_v40, %v1471_v10 }
 0x3c5   :  { %v2045_v27 = vrot.slane %v2044_v38, 2  ;;  %v1452_v28 = vadd.f32 %v1444_v30, %v1436_v26  ;;  %v1453_v32 = vadd.f32 %v1445_v42, %v1437_v8  ;;  %v2031_v33 = vrot.slane %v1471_v10, 4  ;;  %v2774_v26 = vld [vmem:[#allocation8 + $0xa0] sm:$0xff]  }
 0x3c6   :  { %v1474_v5 = vmax.f32 %v1466_v25, 0.0  ;;  %2589 = vmatprep.mubr.bf16.mxu1 %v3268_v0  ;;  %v2037_v34 = vrot.slane %v1472_v40, 4  ;;  %2613 = vmatprep.mubr.bf16.mxu0 %v3268_v0  ;;  %v1469_v35 = vadd.f32 %v2283_v53, %v1454_v4  ;;  %v1470_v52 = vadd.f32 %v2283_v53, %v1455_v23 }
 0x3c7   :  { %v2046_v36 = vmax.f32 %v2044_v38, %v2045_v27  ;;  %v2032_v37 = vmax.f32 %v1471_v10, %v2031_v33  ;;  %v1467_v41 = vadd.f32 %v2283_v53, %v1452_v28  ;;  %v1468_v43 = vadd.f32 %v2283_v53, %v1453_v32 }
 0x3c8   :  { %v2049_v44 = vrot.slane %v1474_v5, 4  ;;  %v2038_v45 = vmax.f32 %v1472_v40, %v2037_v34  ;;  %v3272_v46 = vpack.c.bf16 %v1474_v5, %v1473_v21  ;;  %v1477_v30 = vmax.f32 %v1469_v35, 0.0  ;;  %v2775_v34 = vld [vmem:[#allocation8 + $0xa8] sm:$0xff]  }
 0x3c9   :  { %v2033_v42 = vrot.slane %v2032_v37, 2  ;;  %v1475_v47 = vmax.f32 %v1467_v41, 0.0  ;;  %v1476_v48 = vmax.f32 %v1468_v43, 0.0  ;;  %v1478_v51 = vmax.f32 %v1470_v52, 0.0  ;;  %v2777_v41 = vld [vmem:[#allocation8 + $0xb8] sm:$0xff]  }
 0x3ca   :  { %v2050_v49 = vmax.f32 %v1474_v5, %v2049_v44  ;;  %v2039_v50 = vrot.slane %v2038_v45, 2  ;;  %2590 = vmatmul.mubr.bf16.vlgmr.msra.gmra.mrb[40].mxu1 %v3272_v46  ;;  %2614 = vmatmul.mubr.bf16.vlgmr.msra.gmra.mrb[48].mxu0 %v3272_v46  ;;  %v2067_v59 = vrot.slane %v1477_v30, 4  ;;  %v2047_v54 = vrot.slane %v2046_v36, 1 }
 0x3cb   :  { %v2034_v22 = vmax.f32 %v2032_v37, %v2033_v42  ;;  %2622 = vmatpush3.bf16.msra.mxu1 %v3195_v24  ;;  %v3277_v53 = vpack.c.bf16 %v1476_v48, %v1475_v47  ;;  %v2055_v55 = vrot.slane %v1475_v47, 4  ;;  %v2061_v18 = vrot.slane %v1476_v48, 4  ;;  %v2776_v37 = vld [vmem:[#allocation8 + $0xb0] sm:$0xff]  }
 0x3cc   :  { %v2051_v56 = vrot.slane %v2050_v49, 2  ;;  %v2040_v57 = vmax.f32 %v2038_v45, %v2039_v50  ;;  %2623 = vmatprep.subr.bf16.mxu1 %v2771_v39  ;;  %v1482_v60 = vpack.c.bf16 %v1478_v51, %v1477_v30  ;;  %v2068_v12 = vmax.f32 %v1477_v30, %v2067_v59 }
 0x3cd   :  { %v2035_v62 = vrot.slane %v2034_v22, 1  ;;  %2593 = vmatprep.mubr.bf16.mxu1 %v3277_v53  ;;  %v2056_v63 = vmax.f32 %v1475_v47, %v2055_v55  ;;  %2617 = vmatprep.mubr.bf16.mxu0 %v3277_v53  ;;  %v2073_v2 = vrot.slane %v1478_v51, 4  ;;  %v2062_v24 = vmax.f32 %v1476_v48, %v2061_v18 }
 0x3ce   :  { %v2052_v61 = vmax.f32 %v2050_v49, %v2051_v56  ;;  %v2041_v21 = vrot.slane %v2040_v57, 1  ;;  %v2069_v6 = vrot.slane %v2068_v12, 2  ;;  %v2048_v13 = vmax.f32 %v2046_v36, %v2047_v54 }
 0x3cf   :  { %v2036_v3 = vmax.f32 %v2034_v22, %v2035_v62  ;;  %v2057_v31 = vrot.slane %v2056_v63, 2  ;;  %2624 = vmatpush3.bf16.msra.mxu1 %v2771_v39  ;;  %v2074_v7 = vmax.f32 %v1478_v51, %v2073_v2  ;;  %v2063_v40 = vrot.slane %v2062_v24, 2 }
 0x3d0   :  { %v2053_v9 = vrot.slane %v2052_v61, 1  ;;  %v2042_v10 = vmax.f32 %v2040_v57, %v2041_v21  ;;  %2625 = vmatprep.subr.bf16.mxu1 %v2772_v58  ;;  %v2070_v15 = vmax.f32 %v2068_v12, %v2069_v6 }
 0x3d1   :  { %v2058_v29 = vmax.f32 %v2056_v63, %v2057_v31  ;;  %v2075_v16 = vrot.slane %v2074_v7, 2  ;;  %v2064_v19 = vmax.f32 %v2062_v24, %v2063_v40 }
 0x3d2   :  { %v2054_v17 = vmax.f32 %v2052_v61, %v2053_v9  ;;  %2594 = vmatmul.mubr.bf16.gmra.mrb[44].mxu1 %v1482_v60  ;;  %2618 = vmatmul.mubr.bf16.gmra.mrb[52].mxu0 %v1482_v60  ;;  %v2087_v20 = vsel %vm2015_vm0, %v2042_v10, %v2036_v3  ;;  %v2071_v4 = vrot.slane %v2070_v15, 1 }
 0x3d3   :  { %v2059_v38 = vrot.slane %v2058_v29, 1  ;;  %2626 = vmatpush3.bf16.msra.mxu1 %v2772_v58  ;;  %2637 = vmatprep.mubr.bf16.mxu1 %v3268_v0  ;;  %v2076_v23 = vmax.f32 %v2074_v7, %v2075_v16  ;;  %v2088_v11 = vsel %vm2017_vm1, %v2048_v13, %v2087_v20  ;;  %v2065_v25 = vrot.slane %v2064_v19, 1 }
 0x3d4   :  { %2627 = vmatprep.subr.bf16.mxu1 %v2773_v14  ;;  %v2089_v8 = vsel %vm2019_vm2, %v2054_v17, %v2088_v11  ;;  %v2072_v33 = vmax.f32 %v2070_v15, %v2071_v4 }
 0x3d5   :  { %v2060_v27 = vmax.f32 %v2058_v29, %v2059_v38  ;;  %v2077_v28 = vrot.slane %v2076_v23, 1  ;;  %v2066_v32 = vmax.f32 %v2064_v19, %v2065_v25 }
 0x3d7   :  { %2628 = vmatpush3.bf16.msra.mxu1 %v2773_v14  ;;  %v2090_v5 = vsel %vm2021_vm3, %v2060_v27, %v2089_v8  ;;  %v2078_v35 = vmax.f32 %v2076_v23, %v2077_v28 }
 0x3d8   :  { %2629 = vmatprep.subr.bf16.mxu1 %v2774_v26  ;;  %v2091_v0 = vsel %vm2023_vm4, %v2066_v32, %v2090_v5 }
 0x3d9   :  { %v2092_v52 = vsel %vm2025_vm5, %v2072_v33, %v2091_v0  ;;  %v3334_v0 = vld [vmem:[%s3400_s7] ss:$0 sm:$0xff]  ;;  %s2906_s7 = smov [#allocation10]  }
 0x3da   :  { %v2093_v36 = vsel %vm2027_vm6, %v2078_v35, %v2092_v52  ;;  %s2167_s29 = sshll.u32 %s2906_s7, 4  ;;  %s2168_s29 = int_to_ptr.vmem [resolvable:$true] %s2167_s29 }
 0x3db   :  { %2630 = vmatpush3.bf16.msra.mxu1 %v2774_v26  ;;  %2095 = vst [vmem:[#allocation10 + $0x8] sm:$0xff] %v2093_v36  ;;  %s2866_s2 = scalar_lea.vmem %s2168_s29, 384  ;;  %p2871_p5 = scmp.lt.s32.totalorder %s2168_s29, %s2168_s29 }
 0x3dc   :  { %2631 = vmatprep.subr.bf16.mxu1 %v2775_v34  ;;  %p2867_p4 = scmp.ne.s32.totalorder %s2168_s29, %s2866_s2  ;;  %p2872_p6 = scmp.lt.s32.totalorder %s2866_s2, %s2866_s2 }
 0x3de   :  { %p2873_p7 = por %p2872_p6, %p2871_p5 }
 0x3df   :  { %2632 = vmatpush3.bf16.msra.mxu1 %v2775_v34 }
 0x3e0   :  { %2633 = vmatprep.subr.bf16.mxu1 %v2776_v37  ;;  %p2874_p8 = pnand %p2873_p7, %p2867_p4 }
 0x3e3   :  { %2634 = vmatpush3.bf16.msra.mxu1 %v2776_v37 }
 0x3e4   :  { %2635 = vmatprep.subr.bf16.mxu1 %v2777_v41 }
 0x3e7   :  { %2636 = vmatpush3.bf16.msra.mxu1 %v2777_v41 }
 0x3ea   :  { %2638 = vmatmul.mubr.bf16.vlgmr.msra.gmra.mrb[48].mxu1 %v3272_v46 }
 0x3eb   :  { %2641 = vmatprep.mubr.bf16.mxu1 %v3277_v53 }
 0x3f2   :  { %2642 = vmatmul.mubr.bf16.gmra.mrb[52].mxu1 %v1482_v60 }
 0x49d   :  { %v2591_v43 = vpop.f32.mrb[40].mxu1  ;;  %v2615_v44 = vpop.f32.mrb[48].mxu0 }
 0x49e   :  { %v1581_v45 = vpop.f32.mrb[41].mxu1  ;;  %v1711_v39 = vpop.f32.mrb[49].mxu0  ;;  %v1874_v47 = vrot.slane %v2591_v43, 7 }
 0x49f   :  { %v2592_v30 = vpop.f32.mrb[42].mxu1  ;;  %v2616_v42 = vpop.f32.mrb[50].mxu0  ;;  %v1872_v51 = vrot.slane %v1581_v45, 7 }
 0x4a0   :  { %v1875_v48 = vrot.slane %v2592_v30, 7  ;;  %v1584_v49 = vpop.f32.mrb[43].mxu1  ;;  %v1714_v50 = vpop.f32.mrb[51].mxu0 }
 0x4a1   :  { %v1873_v59 = vrot.slane %v1584_v49, 7 }
 0x4a2   :  { %v1884_v54 = vsel %vm918_vm12, %v1874_v47, %v1875_v48 }
 0x4a3   :  { %v1891_v46 = vsel %vm327_vm13, %v1884_v54, 0.0  ;;  %v1885_v22 = vsel %vm918_vm12, %v1873_v59, %v1874_v47  ;;  %v1886_v53 = vsel %vm918_vm12, %v1872_v51, %v1873_v59 }
 0x4a4   :  { %v3299_v55 = vadd.f32 %v2616_v42, %v1891_v46  ;;  %v1890_v56 = vsel %vm327_vm13, %v1885_v22, 0.0  ;;  %v1889_v57 = vsel %vm327_vm13, %v1886_v53, 0.0 }
 0x4a5   :  { %v1922_v18 = vadd.f32 %v2615_v44, %v1890_v56  ;;  %v1921_v58 = vadd.f32 %v1889_v57, %v1714_v50  ;;  %v2595_v60 = vpop.f32.mrb[44].mxu1  ;;  %v2619_v62 = vpop.f32.mrb[52].mxu0 }
 0x4a6   :  { %v1597_v63 = vpop.f32.mrb[45].mxu1  ;;  %v1727_v12 = vpop.f32.mrb[53].mxu0  ;;  %v1878_v24 = vrot.slane %v2595_v60, 7 }
 0x4a7   :  { %v1876_v2 = vrot.slane %v1597_v63, 7  ;;  %v2596_v61 = vpop.f32.mrb[46].mxu1  ;;  %v2620_v21 = vpop.f32.mrb[54].mxu0 }
 0x4a8   :  { %v1879_v3 = vrot.slane %v2596_v61, 7  ;;  %v1600_v31 = vpop.f32.mrb[47].mxu1  ;;  %v1730_v6 = vpop.f32.mrb[55].mxu0 }
 0x4a9   :  { %v1883_v7 = vsel %vm918_vm12, %v1875_v48, %v1876_v2  ;;  %v1877_v9 = vrot.slane %v1600_v31, 7 }
 0x4aa   :  { %v1892_v10 = vsel %vm327_vm13, %v1883_v7, 0.0  ;;  %v1887_v40 = vsel %vm918_vm12, %v1879_v3, %v1872_v51  ;;  %v1880_v14 = vsel %vm918_vm12, %v1878_v24, %v1879_v3 }
 0x4ab   :  { %v3313_v13 = vadd.f32 %v1892_v10, %v1727_v12  ;;  %v1888_v29 = vsel %vm327_vm13, %v1887_v40, 0.0  ;;  %v1895_v15 = vsel %vm327_vm13, %v1880_v14, 0.0  ;;  %v1881_v16 = vsel %vm918_vm12, %v1877_v9, %v1878_v24 }
 0x4ac   :  { %v1920_v17 = vadd.f32 %v1888_v29, %v1711_v39  ;;  %v1927_v19 = vadd.f32 %v2620_v21, %v1895_v15  ;;  %v1894_v20 = vsel %vm327_vm13, %v1881_v16, 0.0  ;;  %v1882_v38 = vsel %vm918_vm12, %v1876_v2, %v1877_v9 }
 0x4ad   :  { %v1926_v4 = vadd.f32 %v2619_v62, %v1894_v20  ;;  %v1893_v23 = vsel %vm327_vm13, %v1882_v38, 0.0 }
 0x4ae   :  { %v1925_v11 = vadd.f32 %v1893_v23, %v1730_v6 }
 0x4bd   :  { %v2639_v25 = vpop.f32.mrb[48].mxu1 }
 0x4be   :  { %v1841_v26 = vpop.f32.mrb[49].mxu1  ;;  %v1898_v27 = vrot.slane %v2639_v25, 1 }
 0x4bf   :  { %v2640_v8 = vpop.f32.mrb[50].mxu1  ;;  %v1896_v33 = vrot.slane %v1841_v26, 1 }
 0x4c0   :  { %v1899_v28 = vrot.slane %v2640_v8, 1  ;;  %v1844_v32 = vpop.f32.mrb[51].mxu1 }
 0x4c1   :  { %v1897_v5 = vrot.slane %v1844_v32, 1 }
 0x4c2   :  { %v1908_v34 = vsel %vm943_vm14, %v1898_v27, %v1899_v28 }
 0x4c3   :  { %v1914_v35 = vsel %vm328_vm15, %v1908_v34, 0.0  ;;  %v1909_v52 = vsel %vm943_vm14, %v1897_v5, %v1898_v27  ;;  %v1910_v36 = vsel %vm943_vm14, %v1896_v33, %v1897_v5 }
 0x4c4   :  { %v1930_v37 = vadd.f32 %v1922_v18, %v1914_v35  ;;  %v1912_v41 = vsel %vm328_vm15, %v1910_v36, 0.0  ;;  %v1913_v43 = vsel %vm328_vm15, %v1909_v52, 0.0 }
 0x4c5   :  { %v1928_v44 = vadd.f32 %v1920_v17, %v1912_v41  ;;  %v1929_v45 = vadd.f32 %v1921_v58, %v1913_v43  ;;  %v2643_v39 = vpop.f32.mrb[52].mxu1 }
 0x4c6   :  { %v1945_v30 = vadd.f32 %v3334_v0, %v1930_v37  ;;  %v1857_v42 = vpop.f32.mrb[53].mxu1  ;;  %v1902_v59 = vrot.slane %v2643_v39, 1 }
 0x4c7   :  { %v1943_v47 = vadd.f32 %v3334_v0, %v1928_v44  ;;  %v1944_v48 = vadd.f32 %v3334_v0, %v1929_v45  ;;  %v1900_v49 = vrot.slane %v1857_v42, 1  ;;  %v2644_v50 = vpop.f32.mrb[54].mxu1 }
 0x4c8   :  { %v1953_v51 = vmax.f32 %v1945_v30, 0.0  ;;  %v1903_v54 = vrot.slane %v2644_v50, 1  ;;  %v1860_v46 = vpop.f32.mrb[55].mxu1 }
 0x4c9   :  { %v1951_v22 = vmax.f32 %v1943_v47, 0.0  ;;  %v1952_v53 = vmax.f32 %v1944_v48, 0.0  ;;  %v1907_v56 = vsel %vm943_vm14, %v1899_v28, %v1900_v49  ;;  %v1901_v57 = vrot.slane %v1860_v46, 1 }
 0x4ca   :  { %v2108_v18 = vrot.slane %v1953_v51, 4  ;;  %v1915_v58 = vsel %vm328_vm15, %v1907_v56, 0.0  ;;  %v1904_v60 = vsel %vm943_vm14, %v1902_v59, %v1903_v54  ;;  %v1911_v62 = vsel %vm943_vm14, %v1903_v54, %v1896_v33 }
 0x4cb   :  { %v2096_v63 = vrot.slane %v1951_v22, 4  ;;  %v2102_v12 = vrot.slane %v1952_v53, 4  ;;  %v1931_v2 = vadd.f32 %v3299_v55, %v1915_v58  ;;  %v1918_v61 = vsel %vm328_vm15, %v1904_v60, 0.0 }
 0x4cc   :  { %v2109_v21 = vmax.f32 %v1953_v51, %v2108_v18  ;;  %v1919_v24 = vsel %vm328_vm15, %v1911_v62, 0.0  ;;  %v1934_v3 = vadd.f32 %v1926_v4, %v1918_v61  ;;  %v1905_v31 = vsel %vm943_vm14, %v1901_v57, %v1902_v59 }
 0x4cd   :  { %v2097_v6 = vmax.f32 %v1951_v22, %v2096_v63  ;;  %v2103_v7 = vmax.f32 %v1952_v53, %v2102_v12  ;;  %v1946_v9 = vadd.f32 %v3334_v0, %v1931_v2  ;;  %v1935_v10 = vadd.f32 %v1927_v19, %v1919_v24 }
 0x4ce   :  { %v2110_v40 = vrot.slane %v2109_v21, 2  ;;  %v1949_v14 = vadd.f32 %v3334_v0, %v1934_v3  ;;  %v1906_v55 = vsel %vm943_vm14, %v1900_v49, %v1901_v57  ;;  %v1917_v29 = vsel %vm328_vm15, %v1905_v31, 0.0 }
 0x4cf   :  { %v2098_v15 = vrot.slane %v2097_v6, 2  ;;  %v2104_v16 = vrot.slane %v2103_v7, 2  ;;  %v1954_v17 = vmax.f32 %v1946_v9, 0.0  ;;  %v1950_v20 = vadd.f32 %v3334_v0, %v1935_v10 }
 0x4d0   :  { %v2111_v38 = vmax.f32 %v2109_v21, %v2110_v40  ;;  %v1957_v4 = vmax.f32 %v1949_v14, 0.0  ;;  %v1916_v23 = vsel %vm328_vm15, %v1906_v55, 0.0  ;;  %v1933_v19 = vadd.f32 %v1925_v11, %v1917_v29 }
 0x4d1   :  { %v2099_v25 = vmax.f32 %v2097_v6, %v2098_v15  ;;  %v2105_v26 = vmax.f32 %v2103_v7, %v2104_v16  ;;  %v2114_v8 = vrot.slane %v1954_v17, 4  ;;  %v1958_v27 = vmax.f32 %v1950_v20, 0.0 }
 0x4d2   :  { %v2112_v28 = vrot.slane %v2111_v38, 1  ;;  %v2132_v32 = vrot.slane %v1957_v4, 4  ;;  %v1932_v33 = vadd.f32 %v3313_v13, %v1916_v23  ;;  %v1948_v5 = vadd.f32 %v3334_v0, %v1933_v19 }
 0x4d3   :  { %v2100_v34 = vrot.slane %v2099_v25, 1  ;;  %v2106_v35 = vrot.slane %v2105_v26, 1  ;;  %v2115_v52 = vmax.f32 %v1954_v17, %v2114_v8  ;;  %v2138_v36 = vrot.slane %v1958_v27, 4 }
 0x4d4   :  { %v2133_v37 = vmax.f32 %v1957_v4, %v2132_v32  ;;  %v1947_v41 = vadd.f32 %v3334_v0, %v1932_v33  ;;  %v1956_v1 = vmax.f32 %v1948_v5, 0.0  ;;  %v2113_v39 = vmax.f32 %v2111_v38, %v2112_v28 }
 0x4d5   :  { %v2101_v43 = vmax.f32 %v2099_v25, %v2100_v34  ;;  %v2107_v11 = vmax.f32 %v2105_v26, %v2106_v35  ;;  %v2116_v44 = vrot.slane %v2115_v52, 2  ;;  %v2139_v45 = vmax.f32 %v1958_v27, %v2138_v36 }
 0x4d6   :  { %v1955_v30 = vmax.f32 %v1947_v41, 0.0  ;;  %v2126_v42 = vrot.slane %v1956_v1, 4  ;;  %v2134_v48 = vrot.slane %v2133_v37, 2 }
 0x4d7   :  { %v2152_v47 = vsel %vm2015_vm0, %v2107_v11, %v2101_v43  ;;  %v2117_v13 = vmax.f32 %v2115_v52, %v2116_v44  ;;  %v2140_v54 = vrot.slane %v2139_v45, 2 }
 0x4d8   :  { %v2120_v49 = vrot.slane %v1955_v30, 4  ;;  %v2127_v50 = vmax.f32 %v1956_v1, %v2126_v42  ;;  %v2153_v51 = vsel %vm2017_vm1, %v2113_v39, %v2152_v47  ;;  %v2135_v53 = vmax.f32 %v2133_v37, %v2134_v48 }
 0x4d9   :  { %v2118_v59 = vrot.slane %v2117_v13, 1  ;;  %v2141_v18 = vmax.f32 %v2139_v45, %v2140_v54 }
 0x4da   :  { %v2121_v46 = vmax.f32 %v1955_v30, %v2120_v49  ;;  %v2128_v0 = vrot.slane %v2127_v50, 2  ;;  %v2136_v12 = vrot.slane %v2135_v53, 1 }
 0x4db   :  { %v2119_v22 = vmax.f32 %v2117_v13, %v2118_v59  ;;  %v2142_v61 = vrot.slane %v2141_v18, 1 }
 0x4dc   :  { %v2122_v56 = vrot.slane %v2121_v46, 2  ;;  %v2129_v57 = vmax.f32 %v2127_v50, %v2128_v0  ;;  %v2137_v24 = vmax.f32 %v2135_v53, %v2136_v12 }
 0x4dd   :  { %v2154_v58 = vsel %vm2019_vm2, %v2119_v22, %v2153_v51  ;;  %v2143_v31 = vmax.f32 %v2141_v18, %v2142_v61 }
 0x4de   :  { %v2123_v60 = vmax.f32 %v2121_v46, %v2122_v56  ;;  %v2130_v62 = vrot.slane %v2129_v57, 1 }
 0x4e0   :  { %v2124_v63 = vrot.slane %v2123_v60, 1  ;;  %v2131_v2 = vmax.f32 %v2129_v57, %v2130_v62 }
 0x4e2   :  { %v2125_v21 = vmax.f32 %v2123_v60, %v2124_v63 }
 0x4e4   :  { %v2155_v3 = vsel %vm2021_vm3, %v2125_v21, %v2154_v58 }
 0x4e5   :  { %v2156_v6 = vsel %vm2023_vm4, %v2131_v2, %v2155_v3 }
 0x4e6   :  { %v2157_v7 = vsel %vm2025_vm5, %v2137_v24, %v2156_v6 }
 0x4e7   :  { %v2158_v9 = vsel %vm2027_vm6, %v2143_v31, %v2157_v7 }
 0x4e8   :  { %2160 = vst [vmem:[#allocation10 + $0x10] sm:$0xff] %v2158_v9 }
 0x4e9   :  { %2877 = shalt.err (!%p2874_p8)
}
 0x4ea   :  { %s2878_s9 = scalar_lea.hbm %s3401_s8, 384 }
 0x4eb   :  { %p2879_p9 = scmp.ne.s32.totalorder %s3401_s8, %s2878_s9  ;;  %p2882_p10 = scmp.lt.u32.totalorder %s2878_s9, %s3401_s8 }
 0x4ed   :  { %p2884_p11 = pnand %p2882_p10, %p2879_p9 }
 0x4ef   :  { %2887 = shalt.err (!%p2884_p11)
}
 0x4f0   :  { %2170 = dma.vmem_to_hbm [thread:$0]  %s2168_s29, 384, %s3401_s8, [#allocation4]  }
 0x4f1   :  { %2894 = dma.done.wait [#allocation4], 384  }
 0x4f2   :  { %2895 = vsyncadd [#allocation4], 4294966912 }
 0x4f3   :  { %2174 = vsyncpa [#allocation3], 1 }
 0x4f4   :  { %2175 = vsyncpa [#allocation6], 1 }
 0x4f5   :  { %2176 = vsyncpa [#allocation9], 1 }
 0x4f6   :  { %2177 = vsyncpa [#allocation4], 1 }

</bundles_post_ra>
